<compile_context>
chip_gen: v7x
topology: tpu7x:2x2x1
jax: 0.10.0
libtpu: 0.0.40
codegen_flags: <defaults>
</compile_context>

<pallas_src>
import functools

import jax
import jax.numpy as jnp
from jax.experimental import pallas as pl
from jax.experimental.pallas import tpu as pltpu


# ----------------------------------------------------------------------------
# Fused kernel: ConvTranspose2d(2,2) -> 4x (Conv3x3 + folded BN + exact GELU)
# ----------------------------------------------------------------------------
def _unet_up_kernel(xc_ref, dw_ref, db_ref, cw_ref, csc_ref, csh_ref,
                    o_ref, act_ref):
    # xc_ref:  (1, H, W*Cin)      channel-concat input, (W, Cin) lane-merged
    # dw_ref:  (W*Cin, 2*L)       deconv block-diag weight, cols = (kh, w, kw, oc)
    # db_ref:  (1, L)             deconv bias pre-tiled to lane width
    # cw_ref:  (12, L, L)         banded 3x3-conv matrices, [layer*3 + kh]
    # csc_ref: (4, 1, L)          folded BN scale, pre-tiled
    # csh_ref: (4, 1, L)          folded BN shift (incl. conv bias), pre-tiled
    # o_ref:   (1, 2H, L)         lane-dense output, L = 2W*C
    # act_ref: (2H+2, L) VMEM     activation buffer; rows 0 and 2H+1 are the
    #                             zero padding for the H dimension of the conv;
    #                             W-dim SAME padding is baked into cw.
    H = xc_ref.shape[1]
    H2 = o_ref.shape[1]
    L = o_ref.shape[2]

    # Zero only the two padding rows; interior is fully overwritten below.
    zero_row = jnp.zeros((1, L), jnp.float32)
    act_ref[0:1, :] = zero_row
    act_ref[H2 + 1:H2 + 2, :] = zero_row

    # ---- ConvTranspose2d(k=2, s=2) as one block-diagonal matmul.
    #      Output columns ordered (kh, w, kw, oc); the reshape (H, 2L)->(2H, L)
    #      interleaves the kh=0 / kh=1 output rows in registers.
    xc = xc_ref[0]                                              # (H, W*Cin)
    y = jnp.dot(xc, dw_ref[...], preferred_element_type=jnp.float32)   # (H, 2L)
    act_ref[1:1 + H2, :] = y.reshape(H2, L) + db_ref[...]

    # ---- 4 x (Conv3x3 SAME + folded BN + exact GELU), lane-dense in VMEM.
    #      Each conv = 3 banded matmuls (one per kh row shift); no im2col.
    n_layers = csc_ref.shape[0]

    def layer(l, carry):
        z = jnp.dot(act_ref[0:H2, :], cw_ref[3 * l],
                    preferred_element_type=jnp.float32)
        z = z + jnp.dot(act_ref[1:1 + H2, :], cw_ref[3 * l + 1],
                        preferred_element_type=jnp.float32)
        z = z + jnp.dot(act_ref[2:2 + H2, :], cw_ref[3 * l + 2],
                        preferred_element_type=jnp.float32)
        z = z * csc_ref[l] + csh_ref[l]                    # folded BN + bias
        # exact GELU (matches torch.nn.GELU default, erf-based)
        z = 0.5 * z * (1.0 + jax.lax.erf(z * 0.7071067811865476))
        act_ref[1:1 + H2, :] = z
        return carry

    jax.lax.fori_loop(0, n_layers, layer, 0, unroll=True)

    o_ref[...] = act_ref[1:1 + H2, :].reshape(1, H2, L).astype(o_ref.dtype)


# ----------------------------------------------------------------------------
# Structured-weight construction (constant-folded under jit with fixed params).
# ----------------------------------------------------------------------------
def _build_structured_weights(params, W):
    wt = params["ct_w"].astype(jnp.float32)            # (Cin, 2, 2, C)
    Cin, _, _, C = wt.shape
    W2 = 2 * W
    L = W2 * C

    # Deconv block-diagonal weight: dw[w*Cin+ci, kh*L + w*2C + kw*C + oc]
    eye_w = jnp.eye(W, dtype=jnp.float32)
    dw_parts = []
    for kh in range(2):
        blk = wt[:, kh].reshape(Cin, 2 * C)             # (Cin, 2C): (kw, oc)
        dw_parts.append(
            jnp.einsum("wu,cj->wcuj", eye_w, blk).reshape(W * Cin, W * 2 * C))
    dw = jnp.concatenate(dw_parts, axis=1)              # (W*Cin, 2*L)
    db = jnp.tile(params["ct_b"].astype(jnp.float32), W2).reshape(1, L)

    # Banded conv matrices: M[layer*3+kh][(w+kw-1)*C+ci, w*C+co] = w3x3[kh,kw,ci,co]
    # (the W-dim SAME padding is the band boundary -> no left/right lane pad).
    conv_w = params["conv_w"].astype(jnp.float32)       # (4, 3, 3, C, C)
    cw_list = []
    for l in range(conv_w.shape[0]):
        for kh in range(3):
            acc = jnp.zeros((L, L), jnp.float32)
            for kw in range(3):
                shift = jnp.eye(W2, k=1 - kw, dtype=jnp.float32)
                acc = acc + jnp.einsum("uw,ij->uiwj", shift,
                                       conv_w[l, kh, kw]).reshape(L, L)
            cw_list.append(acc)
    cw = jnp.stack(cw_list)                             # (12, L, L)

    csc = jnp.tile(params["conv_scale"].astype(jnp.float32), (1, W2)) \
             .reshape(4, 1, L)
    csh = jnp.tile(params["conv_shift"].astype(jnp.float32), (1, W2)) \
             .reshape(4, 1, L)
    return dw, db, cw, csc, csh


# ----------------------------------------------------------------------------
# Wrapper: NCHW in / NCHW out (matches the PyTorch module interface).
# ----------------------------------------------------------------------------
def unet_up_forward(params, x_nchw, skip_nchw):
    N, Cx, H, W = x_nchw.shape
    Cs = skip_nchw.shape[1]
    Cin = Cx + Cs
    C = params["ct_b"].shape[0]
    H2, W2 = 2 * H, 2 * W
    L = W2 * C

    # NCHW -> NHWC, channel-concat, merge (W, Cin) on the lane dim.
    x = jnp.transpose(x_nchw, (0, 2, 3, 1)).astype(jnp.float32)
    s = jnp.transpose(skip_nchw, (0, 2, 3, 1)).astype(jnp.float32)
    xc = jnp.concatenate([x, s], axis=-1).reshape(N, H, W * Cin)

    dw, db, cw, csc, csh = _build_structured_weights(params, W)

    # VMEM budget (double-buffered blocks + scratch) ~2.3 MiB at these sizes;
    # give explicit headroom well under the v7x 64 MiB / 32 MiB-scoped limit.
    vmem_limit = 16 * 1024 * 1024

    out = pl.pallas_call(
        _unet_up_kernel,
        out_shape=jax.ShapeDtypeStruct((N, H2, L), jnp.float32),
        grid=(N,),
        in_specs=[
            pl.BlockSpec((1, H, W * Cin), lambda n: (n, 0, 0)),
            pl.BlockSpec((W * Cin, 2 * L), lambda n: (0, 0)),
            pl.BlockSpec((1, L), lambda n: (0, 0)),
            pl.BlockSpec((12, L, L), lambda n: (0, 0, 0)),
            pl.BlockSpec((4, 1, L), lambda n: (0, 0, 0)),
            pl.BlockSpec((4, 1, L), lambda n: (0, 0, 0)),
        ],
        out_specs=pl.BlockSpec((1, H2, L), lambda n: (n, 0, 0)),
        scratch_shapes=[pltpu.VMEM((H2 + 2, L), jnp.float32)],
        compiler_params=pltpu.CompilerParams(
            dimension_semantics=("parallel",),
            vmem_limit_bytes=vmem_limit),
    )(xc, dw, db, cw, csc, csh)

    # Lane-dense (N, 2H, 2W*C) back to NCHW for the PyTorch interface.
    out = out.reshape(N, H2, W2, C)
    return jnp.transpose(out, (0, 3, 1, 2))


# ----------------------------------------------------------------------------
# Deterministic parameter construction (shapes from the PyTorch __init__).
# ----------------------------------------------------------------------------
def init_params(key, in_channels, out_channels):
    keys = iter(jax.random.split(key, 32))

    def nrm(shape, s=0.1):
        return s * jax.random.normal(next(keys), shape, jnp.float32)

    C = out_channels
    params = {
        # ConvTranspose2d weight stored as (Cin, kh, kw, Cout).
        "ct_w": nrm((in_channels, 2, 2, C)),
        "ct_b": nrm((C,)),
    }

    conv_w, conv_scale, conv_shift = [], [], []
    for _ in range(4):                     # rcb1.c1, rcb1.c2, rcb2.c1, rcb2.c2
        w = nrm((3, 3, C, C))              # (kh, kw, ci, co)
        b = nrm((C,))
        gamma = 1.0 + nrm((C,))
        beta = nrm((C,))
        run_mean = nrm((C,))
        run_var = jnp.abs(nrm((C,))) + 1.0
        eps = 1e-5
        scale = gamma / jnp.sqrt(run_var + eps)
        shift = beta + (b - run_mean) * scale
        conv_w.append(w)
        conv_scale.append(scale)
        conv_shift.append(shift)
    params["conv_w"] = jnp.stack(conv_w)          # (4, 3, 3, C, C)
    params["conv_scale"] = jnp.stack(conv_scale)  # (4, C)
    params["conv_shift"] = jnp.stack(conv_shift)  # (4, C)
    return params


# ----------------------------------------------------------------------------
# Pure-JAX reference (lax.conv based) for correctness checking.
# ----------------------------------------------------------------------------
def ref_forward(params, x_nchw, skip_nchw):
    x = jnp.transpose(x_nchw, (0, 2, 3, 1)).astype(jnp.float32)
    s = jnp.transpose(skip_nchw, (0, 2, 3, 1)).astype(jnp.float32)
    xc = jnp.concatenate([x, s], axis=-1)
    N, H, W, _ = xc.shape
    wt = params["ct_w"]                         # (Cin, 2, 2, C)
    C = wt.shape[-1]

    y = jnp.einsum("nhwc,cpqk->nhpwqk", xc, wt)
    y = y.reshape(N, 2 * H, 2 * W, C) + params["ct_b"]

    for li in range(4):
        w = params["conv_w"][li]                # (kh, kw, ci, co) = HWIO
        yp = jnp.pad(y, ((0, 0), (1, 1), (1, 1), (0, 0)))
        y = jax.lax.conv_general_dilated(
            yp, w, (1, 1), "VALID",
            dimension_numbers=("NHWC", "HWIO", "NHWC"))
        y = y * params["conv_scale"][li] + params["conv_shift"][li]
        y = 0.5 * y * (1.0 + jax.lax.erf(y * 0.7071067811865476))
    return jnp.transpose(y, (0, 3, 1, 2))


if __name__ == "__main__":
    out_channels = 8
    x_channels = 8                             # channels of x before concat
    skip_channels = 8                          # channels of skip
    in_channels = x_channels + skip_channels   # = 16 (ConvTranspose input)
    # N=4 -> >=2 grid steps per v7x TensorCore (pipelined DMA on all chips);
    # 2W*out_channels = 128 keeps the whole pipeline exactly lane-dense.
    N, H, W = 4, 8, 8

    key = jax.random.PRNGKey(0)
    k_x, k_s, k_p = jax.random.split(key, 3)
    x = jax.random.normal(k_x, (N, x_channels, H, W), jnp.float32)      # NCHW
    skip = jax.random.normal(k_s, (N, skip_channels, H, W), jnp.float32)
    params = init_params(k_p, in_channels, out_channels)

    fwd = jax.jit(functools.partial(unet_up_forward, params))
    out = jax.block_until_ready(fwd(x, skip))

    assert out.shape == (N, out_channels, 2 * H, 2 * W), out.shape
    assert bool(jnp.all(jnp.isfinite(out)))
    ref = ref_forward(params, x, skip)
    max_err = float(jnp.max(jnp.abs(out - ref)))
    assert jnp.allclose(out, ref, atol=1e-3, rtol=1e-3), max_err

    print("KERNEL_OK")
</pallas_src>

<mosaic_0001>
module attributes {stable_mosaic.version = 11 : i64} {
  func.func @_unet_up_kernel(%arg0: i32, %arg1: memref<1x8x128xf32, #tpu.memory_space<vmem>>, %arg2: memref<128x256xf32, #tpu.memory_space<vmem>>, %arg3: memref<1x128xf32, #tpu.memory_space<vmem>>, %arg4: memref<12x128x128xf32, #tpu.memory_space<vmem>>, %arg5: memref<4x1x128xf32, #tpu.memory_space<vmem>>, %arg6: memref<4x1x128xf32, #tpu.memory_space<vmem>>, %arg7: memref<1x16x128xf32, #tpu.memory_space<vmem>>, %arg8: memref<18x128xf32, #tpu.memory_space<vmem>>) attributes {dimension_semantics = [#tpu.dimension_semantics<parallel>], iteration_bounds = array<i64: 4>, scalar_prefetch = 0 : i64, scratch_operands = 1 : i64, tpu.core_type = #tpu.core_type<tc>, window_params = [{transform_indices = @transform_0, window_bounds = array<i64: 1, 8, 128>}, {pipeline_mode = #tpu.pipeline_mode<synchronous>, transform_indices = @transform_1, window_bounds = array<i64: 128, 256>}, {pipeline_mode = #tpu.pipeline_mode<synchronous>, transform_indices = @transform_2, window_bounds = array<i64: 1, 128>}, {pipeline_mode = #tpu.pipeline_mode<synchronous>, transform_indices = @transform_3, window_bounds = array<i64: 12, 128, 128>}, {pipeline_mode = #tpu.pipeline_mode<synchronous>, transform_indices = @transform_4, window_bounds = array<i64: 4, 1, 128>}, {pipeline_mode = #tpu.pipeline_mode<synchronous>, transform_indices = @transform_5, window_bounds = array<i64: 4, 1, 128>}, {transform_indices = @transform_6, window_bounds = array<i64: 1, 16, 128>}]} {
    %cst = arith.constant 0.000000e+00 : f32
    %0 = vector.broadcast %cst : f32 to vector<1x128xf32>
    %c0 = arith.constant 0 : index
    %c0_0 = arith.constant 0 : index
    %1 = vector.load %arg8[%c0, %c0_0] : memref<18x128xf32, #tpu.memory_space<vmem>>, vector<1x128xf32>
    tpu.vector_store %arg8[%c0, %c0_0], %0 {strides = array<i32>} : memref<18x128xf32, #tpu.memory_space<vmem>>, vector<1x128xf32>,
    %c17 = arith.constant 17 : index
    %c0_1 = arith.constant 0 : index
    %2 = vector.load %arg8[%c17, %c0_1] : memref<18x128xf32, #tpu.memory_space<vmem>>, vector<1x128xf32>
    tpu.vector_store %arg8[%c17, %c0_1], %0 {strides = array<i32>} : memref<18x128xf32, #tpu.memory_space<vmem>>, vector<1x128xf32>,
    %c0_2 = arith.constant 0 : index
    %c0_3 = arith.constant 0 : index
    %c0_4 = arith.constant 0 : index
    %3 = vector.load %arg1[%c0_2, %c0_3, %c0_4] : memref<1x8x128xf32, #tpu.memory_space<vmem>>, vector<1x8x128xf32>
    %4 = vector.shape_cast %3 : vector<1x8x128xf32> to vector<8x128xf32>
    %c0_5 = arith.constant 0 : index
    %c0_6 = arith.constant 0 : index
    %5 = vector.load %arg2[%c0_5, %c0_6] : memref<128x256xf32, #tpu.memory_space<vmem>>, vector<128x256xf32>
    %cst_7 = arith.constant dense<0.000000e+00> : vector<8x256xf32>
    %6 = tpu.matmul %4, %5, %cst_7 {dimension_numbers = #tpu.dot_dimension_numbers<[1], [0], [0], [1], [0, 0, 1, 1], [], []>} : vector<8x128xf32>, vector<128x256xf32>, vector<8x256xf32> -> vector<8x256xf32>
    %7 = vector.shape_cast %6 : vector<8x256xf32> to vector<16x128xf32>
    %c0_8 = arith.constant 0 : index
    %c0_9 = arith.constant 0 : index
    %8 = vector.load %arg3[%c0_8, %c0_9] : memref<1x128xf32, #tpu.memory_space<vmem>>, vector<1x128xf32>
    %9 = vector.broadcast %8 : vector<1x128xf32> to vector<16x128xf32>
    %10 = arith.addf %7, %9 : vector<16x128xf32>
    %c1 = arith.constant 1 : index
    %c0_10 = arith.constant 0 : index
    %11 = vector.load %arg8[%c1, %c0_10] : memref<18x128xf32, #tpu.memory_space<vmem>>, vector<16x128xf32>
    tpu.vector_store %arg8[%c1, %c0_10], %10 {strides = array<i32>} : memref<18x128xf32, #tpu.memory_space<vmem>>, vector<16x128xf32>,
    %c0_i32 = arith.constant 0 : i32
    %c0_11 = arith.constant 0 : index
    %c0_12 = arith.constant 0 : index
    %12 = vector.load %arg8[%c0_11, %c0_12] : memref<18x128xf32, #tpu.memory_space<vmem>>, vector<16x128xf32>
    %c3_i32 = arith.constant 3 : i32
    %13 = arith.muli %c3_i32, %c0_i32 : i32
    %14 = arith.index_cast %13 : i32 to index
    %c0_13 = arith.constant 0 : index
    %c0_14 = arith.constant 0 : index
    %15 = vector.load %arg4[%14, %c0_13, %c0_14] : memref<12x128x128xf32, #tpu.memory_space<vmem>>, vector<1x128x128xf32>
    %16 = vector.shape_cast %15 : vector<1x128x128xf32> to vector<128x128xf32>
    %cst_15 = arith.constant dense<0.000000e+00> : vector<16x128xf32>
    %17 = tpu.matmul %12, %16, %cst_15 {dimension_numbers = #tpu.dot_dimension_numbers<[1], [0], [0], [1], [0, 0, 1, 1], [], []>} : vector<16x128xf32>, vector<128x128xf32>, vector<16x128xf32> -> vector<16x128xf32>
    %c1_16 = arith.constant 1 : index
    %c0_17 = arith.constant 0 : index
    %18 = vector.load %arg8[%c1_16, %c0_17] : memref<18x128xf32, #tpu.memory_space<vmem>>, vector<16x128xf32>
    %c3_i32_18 = arith.constant 3 : i32
    %19 = arith.muli %c3_i32_18, %c0_i32 : i32
    %c1_i32 = arith.constant 1 : i32
    %20 = arith.addi %19, %c1_i32 : i32
    %21 = arith.index_cast %20 : i32 to index
    %c0_19 = arith.constant 0 : index
    %c0_20 = arith.constant 0 : index
    %22 = vector.load %arg4[%21, %c0_19, %c0_20] : memref<12x128x128xf32, #tpu.memory_space<vmem>>, vector<1x128x128xf32>
    %23 = vector.shape_cast %22 : vector<1x128x128xf32> to vector<128x128xf32>
    %cst_21 = arith.constant dense<0.000000e+00> : vector<16x128xf32>
    %24 = tpu.matmul %18, %23, %cst_21 {dimension_numbers = #tpu.dot_dimension_numbers<[1], [0], [0], [1], [0, 0, 1, 1], [], []>} : vector<16x128xf32>, vector<128x128xf32>, vector<16x128xf32> -> vector<16x128xf32>
    %25 = arith.addf %17, %24 : vector<16x128xf32>
    %c2 = arith.constant 2 : index
    %c0_22 = arith.constant 0 : index
    %26 = vector.load %arg8[%c2, %c0_22] : memref<18x128xf32, #tpu.memory_space<vmem>>, vector<16x128xf32>
    %c3_i32_23 = arith.constant 3 : i32
    %27 = arith.muli %c3_i32_23, %c0_i32 : i32
    %c2_i32 = arith.constant 2 : i32
    %28 = arith.addi %27, %c2_i32 : i32
    %29 = arith.index_cast %28 : i32 to index
    %c0_24 = arith.constant 0 : index
    %c0_25 = arith.constant 0 : index
    %30 = vector.load %arg4[%29, %c0_24, %c0_25] : memref<12x128x128xf32, #tpu.memory_space<vmem>>, vector<1x128x128xf32>
    %31 = vector.shape_cast %30 : vector<1x128x128xf32> to vector<128x128xf32>
    %cst_26 = arith.constant dense<0.000000e+00> : vector<16x128xf32>
    %32 = tpu.matmul %26, %31, %cst_26 {dimension_numbers = #tpu.dot_dimension_numbers<[1], [0], [0], [1], [0, 0, 1, 1], [], []>} : vector<16x128xf32>, vector<128x128xf32>, vector<16x128xf32> -> vector<16x128xf32>
    %33 = arith.addf %25, %32 : vector<16x128xf32>
    %34 = arith.index_cast %c0_i32 : i32 to index
    %c0_27 = arith.constant 0 : index
    %c0_28 = arith.constant 0 : index
    %35 = vector.load %arg5[%34, %c0_27, %c0_28] : memref<4x1x128xf32, #tpu.memory_space<vmem>>, vector<1x1x128xf32>
    %36 = vector.shape_cast %35 : vector<1x1x128xf32> to vector<1x128xf32>
    %37 = vector.broadcast %36 : vector<1x128xf32> to vector<16x128xf32>
    %38 = arith.mulf %33, %37 : vector<16x128xf32>
    %39 = arith.index_cast %c0_i32 : i32 to index
    %c0_29 = arith.constant 0 : index
    %c0_30 = arith.constant 0 : index
    %40 = vector.load %arg6[%39, %c0_29, %c0_30] : memref<4x1x128xf32, #tpu.memory_space<vmem>>, vector<1x1x128xf32>
    %41 = vector.shape_cast %40 : vector<1x1x128xf32> to vector<1x128xf32>
    %42 = vector.broadcast %41 : vector<1x128xf32> to vector<16x128xf32>
    %43 = arith.addf %38, %42 : vector<16x128xf32>
    %cst_31 = arith.constant 5.000000e-01 : f32
    %44 = vector.broadcast %cst_31 : f32 to vector<16x128xf32>
    %45 = arith.mulf %44, %43 : vector<16x128xf32>
    %cst_32 = arith.constant 0.707106769 : f32
    %46 = vector.broadcast %cst_32 : f32 to vector<16x128xf32>
    %47 = arith.mulf %43, %46 : vector<16x128xf32>
    %48 = math.erf %47 : vector<16x128xf32>
    %cst_33 = arith.constant 1.000000e+00 : f32
    %49 = vector.broadcast %cst_33 : f32 to vector<16x128xf32>
    %50 = arith.addf %49, %48 : vector<16x128xf32>
    %51 = arith.mulf %45, %50 : vector<16x128xf32>
    %c1_34 = arith.constant 1 : index
    %c0_35 = arith.constant 0 : index
    %52 = vector.load %arg8[%c1_34, %c0_35] : memref<18x128xf32, #tpu.memory_space<vmem>>, vector<16x128xf32>
    tpu.vector_store %arg8[%c1_34, %c0_35], %51 {strides = array<i32>} : memref<18x128xf32, #tpu.memory_space<vmem>>, vector<16x128xf32>,
    %c1_i32_36 = arith.constant 1 : i32
    %c0_37 = arith.constant 0 : index
    %c0_38 = arith.constant 0 : index
    %53 = vector.load %arg8[%c0_37, %c0_38] : memref<18x128xf32, #tpu.memory_space<vmem>>, vector<16x128xf32>
    %c3_i32_39 = arith.constant 3 : i32
    %54 = arith.muli %c3_i32_39, %c1_i32_36 : i32
    %55 = arith.index_cast %54 : i32 to index
    %c0_40 = arith.constant 0 : index
    %c0_41 = arith.constant 0 : index
    %56 = vector.load %arg4[%55, %c0_40, %c0_41] : memref<12x128x128xf32, #tpu.memory_space<vmem>>, vector<1x128x128xf32>
    %57 = vector.shape_cast %56 : vector<1x128x128xf32> to vector<128x128xf32>
    %cst_42 = arith.constant dense<0.000000e+00> : vector<16x128xf32>
    %58 = tpu.matmul %53, %57, %cst_42 {dimension_numbers = #tpu.dot_dimension_numbers<[1], [0], [0], [1], [0, 0, 1, 1], [], []>} : vector<16x128xf32>, vector<128x128xf32>, vector<16x128xf32> -> vector<16x128xf32>
    %c1_43 = arith.constant 1 : index
    %c0_44 = arith.constant 0 : index
    %59 = vector.load %arg8[%c1_43, %c0_44] : memref<18x128xf32, #tpu.memory_space<vmem>>, vector<16x128xf32>
    %c3_i32_45 = arith.constant 3 : i32
    %60 = arith.muli %c3_i32_45, %c1_i32_36 : i32
    %c1_i32_46 = arith.constant 1 : i32
    %61 = arith.addi %60, %c1_i32_46 : i32
    %62 = arith.index_cast %61 : i32 to index
    %c0_47 = arith.constant 0 : index
    %c0_48 = arith.constant 0 : index
    %63 = vector.load %arg4[%62, %c0_47, %c0_48] : memref<12x128x128xf32, #tpu.memory_space<vmem>>, vector<1x128x128xf32>
    %64 = vector.shape_cast %63 : vector<1x128x128xf32> to vector<128x128xf32>
    %cst_49 = arith.constant dense<0.000000e+00> : vector<16x128xf32>
    %65 = tpu.matmul %59, %64, %cst_49 {dimension_numbers = #tpu.dot_dimension_numbers<[1], [0], [0], [1], [0, 0, 1, 1], [], []>} : vector<16x128xf32>, vector<128x128xf32>, vector<16x128xf32> -> vector<16x128xf32>
    %66 = arith.addf %58, %65 : vector<16x128xf32>
    %c2_50 = arith.constant 2 : index
    %c0_51 = arith.constant 0 : index
    %67 = vector.load %arg8[%c2_50, %c0_51] : memref<18x128xf32, #tpu.memory_space<vmem>>, vector<16x128xf32>
    %c3_i32_52 = arith.constant 3 : i32
    %68 = arith.muli %c3_i32_52, %c1_i32_36 : i32
    %c2_i32_53 = arith.constant 2 : i32
    %69 = arith.addi %68, %c2_i32_53 : i32
    %70 = arith.index_cast %69 : i32 to index
    %c0_54 = arith.constant 0 : index
    %c0_55 = arith.constant 0 : index
    %71 = vector.load %arg4[%70, %c0_54, %c0_55] : memref<12x128x128xf32, #tpu.memory_space<vmem>>, vector<1x128x128xf32>
    %72 = vector.shape_cast %71 : vector<1x128x128xf32> to vector<128x128xf32>
    %cst_56 = arith.constant dense<0.000000e+00> : vector<16x128xf32>
    %73 = tpu.matmul %67, %72, %cst_56 {dimension_numbers = #tpu.dot_dimension_numbers<[1], [0], [0], [1], [0, 0, 1, 1], [], []>} : vector<16x128xf32>, vector<128x128xf32>, vector<16x128xf32> -> vector<16x128xf32>
    %74 = arith.addf %66, %73 : vector<16x128xf32>
    %75 = arith.index_cast %c1_i32_36 : i32 to index
    %c0_57 = arith.constant 0 : index
    %c0_58 = arith.constant 0 : index
    %76 = vector.load %arg5[%75, %c0_57, %c0_58] : memref<4x1x128xf32, #tpu.memory_space<vmem>>, vector<1x1x128xf32>
    %77 = vector.shape_cast %76 : vector<1x1x128xf32> to vector<1x128xf32>
    %78 = vector.broadcast %77 : vector<1x128xf32> to vector<16x128xf32>
    %79 = arith.mulf %74, %78 : vector<16x128xf32>
    %80 = arith.index_cast %c1_i32_36 : i32 to index
    %c0_59 = arith.constant 0 : index
    %c0_60 = arith.constant 0 : index
    %81 = vector.load %arg6[%80, %c0_59, %c0_60] : memref<4x1x128xf32, #tpu.memory_space<vmem>>, vector<1x1x128xf32>
    %82 = vector.shape_cast %81 : vector<1x1x128xf32> to vector<1x128xf32>
    %83 = vector.broadcast %82 : vector<1x128xf32> to vector<16x128xf32>
    %84 = arith.addf %79, %83 : vector<16x128xf32>
    %cst_61 = arith.constant 5.000000e-01 : f32
    %85 = vector.broadcast %cst_61 : f32 to vector<16x128xf32>
    %86 = arith.mulf %85, %84 : vector<16x128xf32>
    %cst_62 = arith.constant 0.707106769 : f32
    %87 = vector.broadcast %cst_62 : f32 to vector<16x128xf32>
    %88 = arith.mulf %84, %87 : vector<16x128xf32>
    %89 = math.erf %88 : vector<16x128xf32>
    %cst_63 = arith.constant 1.000000e+00 : f32
    %90 = vector.broadcast %cst_63 : f32 to vector<16x128xf32>
    %91 = arith.addf %90, %89 : vector<16x128xf32>
    %92 = arith.mulf %86, %91 : vector<16x128xf32>
    %c1_64 = arith.constant 1 : index
    %c0_65 = arith.constant 0 : index
    %93 = vector.load %arg8[%c1_64, %c0_65] : memref<18x128xf32, #tpu.memory_space<vmem>>, vector<16x128xf32>
    tpu.vector_store %arg8[%c1_64, %c0_65], %92 {strides = array<i32>} : memref<18x128xf32, #tpu.memory_space<vmem>>, vector<16x128xf32>,
    %c2_i32_66 = arith.constant 2 : i32
    %c0_67 = arith.constant 0 : index
    %c0_68 = arith.constant 0 : index
    %94 = vector.load %arg8[%c0_67, %c0_68] : memref<18x128xf32, #tpu.memory_space<vmem>>, vector<16x128xf32>
    %c3_i32_69 = arith.constant 3 : i32
    %95 = arith.muli %c3_i32_69, %c2_i32_66 : i32
    %96 = arith.index_cast %95 : i32 to index
    %c0_70 = arith.constant 0 : index
    %c0_71 = arith.constant 0 : index
    %97 = vector.load %arg4[%96, %c0_70, %c0_71] : memref<12x128x128xf32, #tpu.memory_space<vmem>>, vector<1x128x128xf32>
    %98 = vector.shape_cast %97 : vector<1x128x128xf32> to vector<128x128xf32>
    %cst_72 = arith.constant dense<0.000000e+00> : vector<16x128xf32>
    %99 = tpu.matmul %94, %98, %cst_72 {dimension_numbers = #tpu.dot_dimension_numbers<[1], [0], [0], [1], [0, 0, 1, 1], [], []>} : vector<16x128xf32>, vector<128x128xf32>, vector<16x128xf32> -> vector<16x128xf32>
    %c1_73 = arith.constant 1 : index
    %c0_74 = arith.constant 0 : index
    %100 = vector.load %arg8[%c1_73, %c0_74] : memref<18x128xf32, #tpu.memory_space<vmem>>, vector<16x128xf32>
    %c3_i32_75 = arith.constant 3 : i32
    %101 = arith.muli %c3_i32_75, %c2_i32_66 : i32
    %c1_i32_76 = arith.constant 1 : i32
    %102 = arith.addi %101, %c1_i32_76 : i32
    %103 = arith.index_cast %102 : i32 to index
    %c0_77 = arith.constant 0 : index
    %c0_78 = arith.constant 0 : index
    %104 = vector.load %arg4[%103, %c0_77, %c0_78] : memref<12x128x128xf32, #tpu.memory_space<vmem>>, vector<1x128x128xf32>
    %105 = vector.shape_cast %104 : vector<1x128x128xf32> to vector<128x128xf32>
    %cst_79 = arith.constant dense<0.000000e+00> : vector<16x128xf32>
    %106 = tpu.matmul %100, %105, %cst_79 {dimension_numbers = #tpu.dot_dimension_numbers<[1], [0], [0], [1], [0, 0, 1, 1], [], []>} : vector<16x128xf32>, vector<128x128xf32>, vector<16x128xf32> -> vector<16x128xf32>
    %107 = arith.addf %99, %106 : vector<16x128xf32>
    %c2_80 = arith.constant 2 : index
    %c0_81 = arith.constant 0 : index
    %108 = vector.load %arg8[%c2_80, %c0_81] : memref<18x128xf32, #tpu.memory_space<vmem>>, vector<16x128xf32>
    %c3_i32_82 = arith.constant 3 : i32
    %109 = arith.muli %c3_i32_82, %c2_i32_66 : i32
    %c2_i32_83 = arith.constant 2 : i32
    %110 = arith.addi %109, %c2_i32_83 : i32
    %111 = arith.index_cast %110 : i32 to index
    %c0_84 = arith.constant 0 : index
    %c0_85 = arith.constant 0 : index
    %112 = vector.load %arg4[%111, %c0_84, %c0_85] : memref<12x128x128xf32, #tpu.memory_space<vmem>>, vector<1x128x128xf32>
    %113 = vector.shape_cast %112 : vector<1x128x128xf32> to vector<128x128xf32>
    %cst_86 = arith.constant dense<0.000000e+00> : vector<16x128xf32>
    %114 = tpu.matmul %108, %113, %cst_86 {dimension_numbers = #tpu.dot_dimension_numbers<[1], [0], [0], [1], [0, 0, 1, 1], [], []>} : vector<16x128xf32>, vector<128x128xf32>, vector<16x128xf32> -> vector<16x128xf32>
    %115 = arith.addf %107, %114 : vector<16x128xf32>
    %116 = arith.index_cast %c2_i32_66 : i32 to index
    %c0_87 = arith.constant 0 : index
    %c0_88 = arith.constant 0 : index
    %117 = vector.load %arg5[%116, %c0_87, %c0_88] : memref<4x1x128xf32, #tpu.memory_space<vmem>>, vector<1x1x128xf32>
    %118 = vector.shape_cast %117 : vector<1x1x128xf32> to vector<1x128xf32>
    %119 = vector.broadcast %118 : vector<1x128xf32> to vector<16x128xf32>
    %120 = arith.mulf %115, %119 : vector<16x128xf32>
    %121 = arith.index_cast %c2_i32_66 : i32 to index
    %c0_89 = arith.constant 0 : index
    %c0_90 = arith.constant 0 : index
    %122 = vector.load %arg6[%121, %c0_89, %c0_90] : memref<4x1x128xf32, #tpu.memory_space<vmem>>, vector<1x1x128xf32>
    %123 = vector.shape_cast %122 : vector<1x1x128xf32> to vector<1x128xf32>
    %124 = vector.broadcast %123 : vector<1x128xf32> to vector<16x128xf32>
    %125 = arith.addf %120, %124 : vector<16x128xf32>
    %cst_91 = arith.constant 5.000000e-01 : f32
    %126 = vector.broadcast %cst_91 : f32 to vector<16x128xf32>
    %127 = arith.mulf %126, %125 : vector<16x128xf32>
    %cst_92 = arith.constant 0.707106769 : f32
    %128 = vector.broadcast %cst_92 : f32 to vector<16x128xf32>
    %129 = arith.mulf %125, %128 : vector<16x128xf32>
    %130 = math.erf %129 : vector<16x128xf32>
    %cst_93 = arith.constant 1.000000e+00 : f32
    %131 = vector.broadcast %cst_93 : f32 to vector<16x128xf32>
    %132 = arith.addf %131, %130 : vector<16x128xf32>
    %133 = arith.mulf %127, %132 : vector<16x128xf32>
    %c1_94 = arith.constant 1 : index
    %c0_95 = arith.constant 0 : index
    %134 = vector.load %arg8[%c1_94, %c0_95] : memref<18x128xf32, #tpu.memory_space<vmem>>, vector<16x128xf32>
    tpu.vector_store %arg8[%c1_94, %c0_95], %133 {strides = array<i32>} : memref<18x128xf32, #tpu.memory_space<vmem>>, vector<16x128xf32>,
    %c3_i32_96 = arith.constant 3 : i32
    %c0_97 = arith.constant 0 : index
    %c0_98 = arith.constant 0 : index
    %135 = vector.load %arg8[%c0_97, %c0_98] : memref<18x128xf32, #tpu.memory_space<vmem>>, vector<16x128xf32>
    %c3_i32_99 = arith.constant 3 : i32
    %136 = arith.muli %c3_i32_99, %c3_i32_96 : i32
    %137 = arith.index_cast %136 : i32 to index
    %c0_100 = arith.constant 0 : index
    %c0_101 = arith.constant 0 : index
    %138 = vector.load %arg4[%137, %c0_100, %c0_101] : memref<12x128x128xf32, #tpu.memory_space<vmem>>, vector<1x128x128xf32>
    %139 = vector.shape_cast %138 : vector<1x128x128xf32> to vector<128x128xf32>
    %cst_102 = arith.constant dense<0.000000e+00> : vector<16x128xf32>
    %140 = tpu.matmul %135, %139, %cst_102 {dimension_numbers = #tpu.dot_dimension_numbers<[1], [0], [0], [1], [0, 0, 1, 1], [], []>} : vector<16x128xf32>, vector<128x128xf32>, vector<16x128xf32> -> vector<16x128xf32>
    %c1_103 = arith.constant 1 : index
    %c0_104 = arith.constant 0 : index
    %141 = vector.load %arg8[%c1_103, %c0_104] : memref<18x128xf32, #tpu.memory_space<vmem>>, vector<16x128xf32>
    %c3_i32_105 = arith.constant 3 : i32
    %142 = arith.muli %c3_i32_105, %c3_i32_96 : i32
    %c1_i32_106 = arith.constant 1 : i32
    %143 = arith.addi %142, %c1_i32_106 : i32
    %144 = arith.index_cast %143 : i32 to index
    %c0_107 = arith.constant 0 : index
    %c0_108 = arith.constant 0 : index
    %145 = vector.load %arg4[%144, %c0_107, %c0_108] : memref<12x128x128xf32, #tpu.memory_space<vmem>>, vector<1x128x128xf32>
    %146 = vector.shape_cast %145 : vector<1x128x128xf32> to vector<128x128xf32>
    %cst_109 = arith.constant dense<0.000000e+00> : vector<16x128xf32>
    %147 = tpu.matmul %141, %146, %cst_109 {dimension_numbers = #tpu.dot_dimension_numbers<[1], [0], [0], [1], [0, 0, 1, 1], [], []>} : vector<16x128xf32>, vector<128x128xf32>, vector<16x128xf32> -> vector<16x128xf32>
    %148 = arith.addf %140, %147 : vector<16x128xf32>
    %c2_110 = arith.constant 2 : index
    %c0_111 = arith.constant 0 : index
    %149 = vector.load %arg8[%c2_110, %c0_111] : memref<18x128xf32, #tpu.memory_space<vmem>>, vector<16x128xf32>
    %c3_i32_112 = arith.constant 3 : i32
    %150 = arith.muli %c3_i32_112, %c3_i32_96 : i32
    %c2_i32_113 = arith.constant 2 : i32
    %151 = arith.addi %150, %c2_i32_113 : i32
    %152 = arith.index_cast %151 : i32 to index
    %c0_114 = arith.constant 0 : index
    %c0_115 = arith.constant 0 : index
    %153 = vector.load %arg4[%152, %c0_114, %c0_115] : memref<12x128x128xf32, #tpu.memory_space<vmem>>, vector<1x128x128xf32>
    %154 = vector.shape_cast %153 : vector<1x128x128xf32> to vector<128x128xf32>
    %cst_116 = arith.constant dense<0.000000e+00> : vector<16x128xf32>
    %155 = tpu.matmul %149, %154, %cst_116 {dimension_numbers = #tpu.dot_dimension_numbers<[1], [0], [0], [1], [0, 0, 1, 1], [], []>} : vector<16x128xf32>, vector<128x128xf32>, vector<16x128xf32> -> vector<16x128xf32>
    %156 = arith.addf %148, %155 : vector<16x128xf32>
    %157 = arith.index_cast %c3_i32_96 : i32 to index
    %c0_117 = arith.constant 0 : index
    %c0_118 = arith.constant 0 : index
    %158 = vector.load %arg5[%157, %c0_117, %c0_118] : memref<4x1x128xf32, #tpu.memory_space<vmem>>, vector<1x1x128xf32>
    %159 = vector.shape_cast %158 : vector<1x1x128xf32> to vector<1x128xf32>
    %160 = vector.broadcast %159 : vector<1x128xf32> to vector<16x128xf32>
    %161 = arith.mulf %156, %160 : vector<16x128xf32>
    %162 = arith.index_cast %c3_i32_96 : i32 to index
    %c0_119 = arith.constant 0 : index
    %c0_120 = arith.constant 0 : index
    %163 = vector.load %arg6[%162, %c0_119, %c0_120] : memref<4x1x128xf32, #tpu.memory_space<vmem>>, vector<1x1x128xf32>
    %164 = vector.shape_cast %163 : vector<1x1x128xf32> to vector<1x128xf32>
    %165 = vector.broadcast %164 : vector<1x128xf32> to vector<16x128xf32>
    %166 = arith.addf %161, %165 : vector<16x128xf32>
    %cst_121 = arith.constant 5.000000e-01 : f32
    %167 = vector.broadcast %cst_121 : f32 to vector<16x128xf32>
    %168 = arith.mulf %167, %166 : vector<16x128xf32>
    %cst_122 = arith.constant 0.707106769 : f32
    %169 = vector.broadcast %cst_122 : f32 to vector<16x128xf32>
    %170 = arith.mulf %166, %169 : vector<16x128xf32>
    %171 = math.erf %170 : vector<16x128xf32>
    %cst_123 = arith.constant 1.000000e+00 : f32
    %172 = vector.broadcast %cst_123 : f32 to vector<16x128xf32>
    %173 = arith.addf %172, %171 : vector<16x128xf32>
    %174 = arith.mulf %168, %173 : vector<16x128xf32>
    %c1_124 = arith.constant 1 : index
    %c0_125 = arith.constant 0 : index
    %175 = vector.load %arg8[%c1_124, %c0_125] : memref<18x128xf32, #tpu.memory_space<vmem>>, vector<16x128xf32>
    tpu.vector_store %arg8[%c1_124, %c0_125], %174 {strides = array<i32>} : memref<18x128xf32, #tpu.memory_space<vmem>>, vector<16x128xf32>,
    %c4_i32 = arith.constant 4 : i32
    %c1_126 = arith.constant 1 : index
    %c0_127 = arith.constant 0 : index
    %176 = vector.load %arg8[%c1_126, %c0_127] : memref<18x128xf32, #tpu.memory_space<vmem>>, vector<16x128xf32>
    %177 = vector.shape_cast %176 : vector<16x128xf32> to vector<1x16x128xf32>
    %c0_128 = arith.constant 0 : index
    %c0_129 = arith.constant 0 : index
    %c0_130 = arith.constant 0 : index
    %178 = vector.load %arg7[%c0_128, %c0_129, %c0_130] : memref<1x16x128xf32, #tpu.memory_space<vmem>>, vector<1x16x128xf32>
    tpu.vector_store %arg7[%c0_128, %c0_129, %c0_130], %177 {strides = array<i32>} : memref<1x16x128xf32, #tpu.memory_space<vmem>>, vector<1x16x128xf32>,
    return
  }
  func.func @transform_0(%arg0: i32) -> (i32, i32, i32) {
    %c0_i32 = arith.constant 0 : i32
    %c0_i32_0 = arith.constant 0 : i32
    %c0_i32_1 = arith.constant 0 : i32
    return %arg0, %c0_i32, %c0_i32_0 : i32, i32, i32
  }
  func.func @transform_1(%arg0: i32) -> (i32, i32) {
    %c0_i32 = arith.constant 0 : i32
    %c0_i32_0 = arith.constant 0 : i32
    %c0_i32_1 = arith.constant 0 : i32
    return %c0_i32, %c0_i32_0 : i32, i32
  }
  func.func @transform_2(%arg0: i32) -> (i32, i32) {
    %c0_i32 = arith.constant 0 : i32
    %c0_i32_0 = arith.constant 0 : i32
    %c0_i32_1 = arith.constant 0 : i32
    return %c0_i32, %c0_i32_0 : i32, i32
  }
  func.func @transform_3(%arg0: i32) -> (i32, i32, i32) {
    %c0_i32 = arith.constant 0 : i32
    %c0_i32_0 = arith.constant 0 : i32
    %c0_i32_1 = arith.constant 0 : i32
    %c0_i32_2 = arith.constant 0 : i32
    return %c0_i32, %c0_i32_0, %c0_i32_1 : i32, i32, i32
  }
  func.func @transform_4(%arg0: i32) -> (i32, i32, i32) {
    %c0_i32 = arith.constant 0 : i32
    %c0_i32_0 = arith.constant 0 : i32
    %c0_i32_1 = arith.constant 0 : i32
    %c0_i32_2 = arith.constant 0 : i32
    return %c0_i32, %c0_i32_0, %c0_i32_1 : i32, i32, i32
  }
  func.func @transform_5(%arg0: i32) -> (i32, i32, i32) {
    %c0_i32 = arith.constant 0 : i32
    %c0_i32_0 = arith.constant 0 : i32
    %c0_i32_1 = arith.constant 0 : i32
    %c0_i32_2 = arith.constant 0 : i32
    return %c0_i32, %c0_i32_0, %c0_i32_1 : i32, i32, i32
  }
  func.func @transform_6(%arg0: i32) -> (i32, i32, i32) {
    %c0_i32 = arith.constant 0 : i32
    %c0_i32_0 = arith.constant 0 : i32
    %c0_i32_1 = arith.constant 0 : i32
    return %arg0, %c0_i32, %c0_i32_0 : i32, i32, i32
  }
}

</mosaic_0001>

<bundles_post_ra>
// kernel: tile.14
= control target key start
LH: loop header
LB: loop body
LE: loop exit
PB: predicated region body
PF: predicated region fallthrough
CT: control target
= control target key end

     0   :  { %s28_s0 = inlined_call_operand.vmem [shape: f32[8], index: 0, kind: input, shape index: {}]   ;;  %s29_s1 = inlined_call_operand.vmem [shape: f32[16,8], index: 1, kind: output, shape index: {}]  }
   0x1   :  { %v4_v0 = vld [vmem:[%s28_s0] ss:$0 sm:$0xff] }
   0x2   :  { %5 = vst [vmem:[%s29_s1] sm:$0xff] %v4_v0  ;;  %8 = vst [vmem:[%s29_s1 + $0x8] sm:$0xff] %v4_v0 }

// kernel: tile.15
= control target key start
LH: loop header
LB: loop body
LE: loop exit
PB: predicated region body
PF: predicated region fallthrough
CT: control target
= control target key end

     0   :  { %s131_s10 = smov 120   ;;  %s132_s11 = smov 104   ;;  %vm3_vm0 = vcmask 64512   ;;  %vm9_vm1 = vcmask 1048512   ;;  %vm15_vm2 = vcmask 982912   ;;  %vm21_vm3 = vcmask 917312   ;;  %s207_s0 = inlined_call_operand.vmem [shape: f32[16,8], index: 0, kind: input, shape index: {}]   ;;  %s208_s1 = inlined_call_operand.vmem [shape: f32[1,128], index: 1, kind: output, shape index: {}]  }
   0x1   :  { %v101_v0 = vld [vmem:[%s207_s0 + $0xf] sm:$0x1]   ;;  %v103_v1 = vld [vmem:[%s207_s0 + $0xd] sm:$0x1]   ;;  %v102_v2 = vld [vmem:[%s207_s0 + $0xe] sm:$0x1]  }
   0x2   :  { %7 = vrot.lane.b32.xlu0 %v101_v0, %s131_s10  ;;  %19 = vrot.lane.b32.xlu1 %v103_v1, %s132_s11  ;;  %v104_v3 = vld [vmem:[%s207_s0 + $0xc] sm:$0x1]   ;;  %s133_s16 = smov 112   ;;  %s134_s17 = smov 96   ;;  %v105_v4 = vld [vmem:[%s207_s0 + $0xb] sm:$0x1]  }
   0x3   :  { %v106_v5 = vld [vmem:[%s207_s0 + $0xa] sm:$0x1]   ;;  %v2_v6 = vld [vmem:[%s207_s0] sm:$0x1]   ;;  %s135_s24 = smov 88   ;;  %s136_s25 = smov 80  }
   0x4   :  { %4 = vst.msk [vmem:[#allocation0] sm:$0x1] %vm3_vm0, %v2_v6   ;;  %v107_v7 = vld [vmem:[%s207_s0 + $0x9] sm:$0x1]   ;;  %v108_v8 = vld [vmem:[%s207_s0 + $0x8] sm:$0x1]  }
   0x5   :  { %s137_s30 = smov 72   ;;  %s138_s2 = smov 64   ;;  %v109_v9 = vld [vmem:[%s207_s0 + $0x7] sm:$0x1]   ;;  %v110_v10 = vld [vmem:[%s207_s0 + $0x6] sm:$0x1]  }
   0x6   :  { %13 = vrot.lane.b32.xlu0 %v102_v2, %s133_s16  ;;  %25 = vrot.lane.b32.xlu1 %v104_v3, %s134_s17  ;;  %s139_s7 = smov 56   ;;  %s140_s8 = smov 48   ;;  %v111_v11 = vld [vmem:[%s207_s0 + $0x5] sm:$0x1]   ;;  %v112_v12 = vld [vmem:[%s207_s0 + $0x4] sm:$0x1]  }
   0x7   :  { %s141_s13 = smov 40   ;;  %s142_s14 = smov 32   ;;  %v113_v13 = vld [vmem:[%s207_s0 + $0x3] sm:$0x1]   ;;  %v114_v14 = vld [vmem:[%s207_s0 + $0x2] sm:$0x1]  }
   0x8   :  { %s143_s19 = smov 24   ;;  %s144_s20 = smov 16   ;;  %v115_v15 = vld [vmem:[%s207_s0 + $0x1] sm:$0x1]   ;;  %vm27_vm4 = vcmask 851712   ;;  %vm33_vm5 = vcmask 786112  }
   0x9   :  { %s145_s0 = smov 8   ;;  %vm39_vm6 = vcmask 720512   ;;  %vm45_vm7 = vcmask 654912   ;;  %vm51_vm8 = vcmask 589312   ;;  %vm57_vm9 = vcmask 523712  }
   0xa   :  { %31 = vrot.lane.b32.xlu0 %v105_v4, %s135_s24  ;;  %37 = vrot.lane.b32.xlu1 %v106_v5, %s136_s25  ;;  %vm63_vm10 = vcmask 458112   ;;  %vm69_vm11 = vcmask 392512   ;;  %vm75_vm12 = vcmask 326912   ;;  %vm81_vm13 = vcmask 261312  }
   0xb   :  { %vm87_vm14 = vcmask 195712   ;;  %vm93_vm15 = vcmask 130112  }
   0xe   :  { %43 = vrot.lane.b32.xlu0 %v107_v7, %s137_s30  ;;  %49 = vrot.lane.b32.xlu1 %v108_v8, %s138_s2 }
  0x12   :  { %55 = vrot.lane.b32.xlu0 %v109_v9, %s139_s7  ;;  %61 = vrot.lane.b32.xlu1 %v110_v10, %s140_s8 }
  0x16   :  { %67 = vrot.lane.b32.xlu0 %v111_v11, %s141_s13  ;;  %73 = vrot.lane.b32.xlu1 %v112_v12, %s142_s14 }
  0x1a   :  { %79 = vrot.lane.b32.xlu0 %v113_v13, %s143_s19  ;;  %85 = vrot.lane.b32.xlu1 %v114_v14, %s144_s20 }
  0x1e   :  { %91 = vrot.lane.b32.xlu0 %v115_v15, %s145_s0 }
  0x74   :  { %v8_v16 = vpop.permute.xlu0 %7   ;;  %v20_v17 = vpop.permute.xlu1 %19  }
  0x75   :  { %10 = vst.msk [vmem:[#allocation0] sm:$0x1] %vm9_vm1, %v8_v16  }
  0x78   :  { %v14_v18 = vpop.permute.xlu0 %13   ;;  %v26_v19 = vpop.permute.xlu1 %25  }
  0x79   :  { %16 = vst.msk [vmem:[#allocation0] sm:$0x1] %vm15_vm2, %v14_v18  }
  0x7a   :  { %22 = vst.msk [vmem:[#allocation0] sm:$0x1] %vm21_vm3, %v20_v17  }
  0x7b   :  { %28 = vst.msk [vmem:[#allocation0] sm:$0x1] %vm27_vm4, %v26_v19  }
  0x7c   :  { %v32_v20 = vpop.permute.xlu0 %31   ;;  %v38_v21 = vpop.permute.xlu1 %37  }
  0x7d   :  { %34 = vst.msk [vmem:[#allocation0] sm:$0x1] %vm33_vm5, %v32_v20  }
  0x7e   :  { %40 = vst.msk [vmem:[#allocation0] sm:$0x1] %vm39_vm6, %v38_v21  }
  0x80   :  { %v44_v22 = vpop.permute.xlu0 %43   ;;  %v50_v23 = vpop.permute.xlu1 %49  }
  0x81   :  { %46 = vst.msk [vmem:[#allocation0] sm:$0x1] %vm45_vm7, %v44_v22  }
  0x82   :  { %52 = vst.msk [vmem:[#allocation0] sm:$0x1] %vm51_vm8, %v50_v23  }
  0x84   :  { %v56_v24 = vpop.permute.xlu0 %55   ;;  %v62_v25 = vpop.permute.xlu1 %61  }
  0x85   :  { %58 = vst.msk [vmem:[#allocation0] sm:$0x1] %vm57_vm9, %v56_v24  }
  0x86   :  { %64 = vst.msk [vmem:[#allocation0] sm:$0x1] %vm63_vm10, %v62_v25  }
  0x88   :  { %v68_v26 = vpop.permute.xlu0 %67   ;;  %v74_v27 = vpop.permute.xlu1 %73  }
  0x89   :  { %70 = vst.msk [vmem:[#allocation0] sm:$0x1] %vm69_vm11, %v68_v26  }
  0x8a   :  { %76 = vst.msk [vmem:[#allocation0] sm:$0x1] %vm75_vm12, %v74_v27  }
  0x8c   :  { %v80_v28 = vpop.permute.xlu0 %79   ;;  %v86_v29 = vpop.permute.xlu1 %85  }
  0x8d   :  { %82 = vst.msk [vmem:[#allocation0] sm:$0x1] %vm81_vm13, %v80_v28  }
  0x8e   :  { %88 = vst.msk [vmem:[#allocation0] sm:$0x1] %vm87_vm14, %v86_v29  }
  0x90   :  { %v92_v30 = vpop.permute.xlu0 %91  }
  0x91   :  { %94 = vst.msk [vmem:[#allocation0] sm:$0x1] %vm93_vm15, %v92_v30  }
  0x98   :  { %v98_v31 = vld [vmem:[#allocation0] sm:$0x1] }
  0x99   :  { %100 = vst [vmem:[%s208_s1] sm:$0x1] %v98_v31 }

// kernel: unet_up_forward.1
= control target key start
LH: loop header
LB: loop body
LE: loop exit
PB: predicated region body
PF: predicated region fallthrough
CT: control target
= control target key end

     0   :  { %s3047_s21 = smov 0   ;;  %s3771_s0 = inlined_call_operand.vmem [shape: f32[4,8,128], index: 0, kind: input, shape index: {}]   ;;  %s3772_s1 = inlined_call_operand.vmem [shape: f32[128,256], index: 1, kind: input, shape index: {}]   ;;  %s3773_s2 = inlined_call_operand.vmem [shape: f32[1,128], index: 2, kind: input, shape index: {}]   ;;  %s3774_s3 = inlined_call_operand.vmem [shape: f32[12,128,128], index: 3, kind: input, shape index: {}]   ;;  %s3775_s4 = inlined_call_operand.vmem [shape: f32[4,1,128], index: 4, kind: input, shape index: {}]   ;;  %s3776_s5 = inlined_call_operand.vmem [shape: f32[4,1,128], index: 5, kind: input, shape index: {}]   ;;  %s3777_s6 = inlined_call_operand.vmem [shape: f32[4,16,128], index: 6, kind: output, shape index: {}]  }
   0x1 LB: > { %s1706_s22 = sadd.s32 4294967295, %s3008_s21   ;;  %p1710_p0 = scmp.ge.s32.totalorder %s3008_s21, 1  ;;  %s3008_s21 = sphi %s3047_s21, %s16_s21  }
   0x2   : > { %p211_p1 = scmp.lt.s32.totalorder %s3008_s21, 5 }
   0x4   : > { %p212_p2 = pnand %p1710_p0, %p211_p1 }
   0x5   : > { %v253_v0 = vld [vmem:[%s3772_s1 + $0x8] sm:$0xff] (!%p212_p2)  ;;  %v255_v1 = vld [vmem:[%s3772_s1 + $0x18] sm:$0xff] (!%p212_p2)  ;;  %v252_v2 = vld [vmem:[%s3772_s1] sm:$0xff] (!%p212_p2)  ;;  %v3010_v7 = vmov (!%p212_p2), 0.0   ;;  %p240_p3 = scmp.lt.s32.totalorder (!%p212_p2), %s1706_s22, 3 }
   0x6   : > { %215 = sbr.rel (%p212_p2) target bundleno = 1456 (0x5b0), region = 44  ;;  %v2544_v3 = vpack.c.bf16 (!%p212_p2), %v255_v1, %v253_v0  ;;  %v254_v4 = vld [vmem:[%s3772_s1 + $0x10] sm:$0xff] (!%p212_p2)  ;;  %v257_v5 = vld [vmem:[%s3772_s1 + $0x28] sm:$0xff] (!%p212_p2)  ;;  %v259_v6 = vld [vmem:[%s3772_s1 + $0x38] sm:$0xff] (!%p212_p2)  ;;  %249 = vst [vmem:[#allocation2] sm:$0x1] (!%p212_p2), %v3010_v7  ;;  %348 = vmatprep.mubr.f32.mxu0 (!%p212_p2), %v3010_v7 }
   0x7   : > { %250 = vst [vmem:[#allocation2 + $0x11] sm:$0x1] (!%p212_p2), %v3010_v7  ;;  %v2546_v8 = vpack.c.bf16 (!%p212_p2), %v254_v4, %v252_v2  ;;  %v2548_v9 = vpack.c.bf16 (!%p212_p2), %v259_v6, %v257_v5  ;;  %v256_v10 = vld [vmem:[%s3772_s1 + $0x20] sm:$0xff] (!%p212_p2)  ;;  %v258_v11 = vld [vmem:[%s3772_s1 + $0x30] sm:$0xff] (!%p212_p2)  ;;  %v261_v12 = vld [vmem:[%s3772_s1 + $0x48] sm:$0xff] (!%p212_p2) }
   0x8   : > { %2545 = vmatprep.subr.bf16.mxu0 (!%p212_p2), %v2544_v3  ;;  %v263_v13 = vld [vmem:[%s3772_s1 + $0x58] sm:$0xff] (!%p212_p2)  ;;  %v2550_v14 = vpack.c.bf16 (!%p212_p2), %v258_v11, %v256_v10  ;;  %v260_v16 = vld [vmem:[%s3772_s1 + $0x40] sm:$0xff] (!%p212_p2)  ;;  %v262_v17 = vld [vmem:[%s3772_s1 + $0x50] sm:$0xff] (!%p212_p2) }
   0x9   : > { %2547 = vmatpush1.bf16.msra.mxu0 (!%p212_p2), %v2546_v8  ;;  %v2552_v15 = vpack.c.bf16 (!%p212_p2), %v263_v13, %v261_v12  ;;  %v265_v18 = vld [vmem:[%s3772_s1 + $0x68] sm:$0xff] (!%p212_p2)  ;;  %v267_v19 = vld [vmem:[%s3772_s1 + $0x78] sm:$0xff] (!%p212_p2)  ;;  %v2554_v20 = vpack.c.bf16 (!%p212_p2), %v262_v17, %v260_v16  ;;  %v264_v22 = vld [vmem:[%s3772_s1 + $0x60] sm:$0xff] (!%p212_p2)  ;;  %v3011_v16 = vmov (!%p212_p2), 1935823168  }
   0xa   : > { %2549 = vmatprep.subr.bf16.mxu0 (!%p212_p2), %v2548_v9  ;;  %v2556_v21 = vpack.c.bf16 (!%p212_p2), %v267_v19, %v265_v18  ;;  %v266_v23 = vld [vmem:[%s3772_s1 + $0x70] sm:$0xff] (!%p212_p2)  ;;  %v269_v24 = vld [vmem:[%s3772_s1 + $0x88] sm:$0xff] (!%p212_p2)  ;;  %v271_v25 = vld [vmem:[%s3772_s1 + $0x98] sm:$0xff] (!%p212_p2)  ;;  %v362_v17 = vunpack.c.l.s4 (!%p212_p2), %v3011_v16  ;;  %v364_v18 = vlaneseq (!%p212_p2) }
   0xb   : > { %v1715_v26 = vld [vmem:[%s3774_s3 + $0x80] sm:$0xff] (!%p212_p2)  ;;  %v1716_v27 = vld [vmem:[%s3774_s3 + $0x88] sm:$0xff] (!%p212_p2)  ;;  %v1717_v28 = vld [vmem:[%s3774_s3 + $0x90] sm:$0xff] (!%p212_p2)  ;;  %v2558_v29 = vpack.c.bf16 (!%p212_p2), %v266_v23, %v264_v22  ;;  %v2560_v33 = vpack.c.bf16 (!%p212_p2), %v271_v25, %v269_v24 }
   0xc   : > { %v268_v30 = vld [vmem:[%s3772_s1 + $0x80] sm:$0xff] (!%p212_p2)  ;;  %v2576_v31 = vpack.c.bf16 (!%p212_p2), %v1716_v27, %v1715_v26  ;;  %v1718_v32 = vld [vmem:[%s3774_s3 + $0x98] sm:$0xff] (!%p212_p2)  ;;  %v270_v34 = vld [vmem:[%s3772_s1 + $0x90] sm:$0xff] (!%p212_p2)  ;;  %v363_v19 = vunpack.c.0.s8 (!%p212_p2), %v362_v17 }
   0xd   : > { %2551 = vmatpush1.bf16.msra.mxu0 %v2550_v14  ;;  %v2580_v35 = vpack.c.bf16 %v1718_v32, %v1717_v28  ;;  %v1719_v36 = vld [vmem:[%s3774_s3 + $0xa0] sm:$0xff]  ;;  %v1720_v37 = vld [vmem:[%s3774_s3 + $0xa8] sm:$0xff]  ;;  %v275_v39 = vld [vmem:[%s3772_s1 + $0xb8] sm:$0xff]  ;;  %v2562_v40 = vpack.c.bf16 %v270_v34, %v268_v30  ;;  %s3779_s22 = smov (!%p240_p3, %s1706_s22), 3 }
   0xe   : > { %2553 = vmatprep.subr.bf16.mxu0 %v2552_v15  ;;  %v273_v38 = vld [vmem:[%s3772_s1 + $0xa8] sm:$0xff]  ;;  %2577 = vmatprep.subr.bf16.mxu1 %v2576_v31  ;;  %v272_v41 = vld [vmem:[%s3772_s1 + $0xa0] sm:$0xff]  ;;  %v2584_v42 = vpack.c.bf16 %v1720_v37, %v1719_v36  ;;  %v274_v44 = vld [vmem:[%s3772_s1 + $0xb0] sm:$0xff]  ;;  %s1711_s13 = sshll.u32 %s3779_s22, 3  ;;  %s1907_s7 = sshll.u32 %s3779_s22, 4 }
   0xf   : > { %2579 = vmatpush3.bf16.msra.mxu1 %v2576_v31  ;;  %v2564_v43 = vpack.c.bf16 %v275_v39, %v273_v38  ;;  %v1721_v45 = vld [vmem:[%s3774_s3 + $0xb0] sm:$0xff]  ;;  %v1722_v46 = vld [vmem:[%s3774_s3 + $0xb8] sm:$0xff]  ;;  %v277_v47 = vld [vmem:[%s3772_s1 + $0xc8] sm:$0xff]  ;;  %v2566_v49 = vpack.c.bf16 %v274_v44, %v272_v41  ;;  %s243_s16 = scalar_lea.vmem %s3771_s0, %s1711_s13  ;;  %s248_s10 = scalar_lea.vmem %s3777_s6, %s1907_s7 }
  0x10   : > { %2581 = vmatprep.subr.bf16.mxu1 %v2580_v35  ;;  %v279_v48 = vld [vmem:[%s3772_s1 + $0xd8] sm:$0xff]  ;;  %v2588_v50 = vpack.c.bf16 %v1722_v46, %v1721_v45  ;;  %v276_v52 = vld [vmem:[%s3772_s1 + $0xc0] sm:$0xff]  ;;  %v278_v53 = vld [vmem:[%s3772_s1 + $0xd0] sm:$0xff] }
  0x11   : > { %2555 = vmatpush1.bf16.msra.mxu0 %v2554_v20  ;;  %v2568_v51 = vpack.c.bf16 %v279_v48, %v277_v47  ;;  %v281_v54 = vld [vmem:[%s3772_s1 + $0xe8] sm:$0xff]  ;;  %v283_v55 = vld [vmem:[%s3772_s1 + $0xf8] sm:$0xff]  ;;  %v2570_v56 = vpack.c.bf16 %v278_v53, %v276_v52  ;;  %v280_v58 = vld [vmem:[%s3772_s1 + $0xe0] sm:$0xff]  ;;  %v365_v20 = vshrl.u32 %v364_v18, 7 }
  0x12   : > { %2557 = vmatprep.subr.bf16.mxu0 %v2556_v21  ;;  %v2572_v57 = vpack.c.bf16 %v283_v55, %v281_v54  ;;  %v282_v59 = vld [vmem:[%s3772_s1 + $0xf0] sm:$0xff]  ;;  %v251_v61 = vld [vmem:[%s243_s16] sm:$0xff]  ;;  %v1724_v63 = vld [vmem:[%s3774_s3 + $0xc8] sm:$0xff] }
  0x13   : > { %2583 = vmatpush3.bf16.msra.mxu1 %v2580_v35  ;;  %v2574_v60 = vpack.c.bf16 %v282_v59, %v280_v58  ;;  %v1723_v62 = vld [vmem:[%s3774_s3 + $0xc0] sm:$0xff]  ;;  %v1725_v1 = vld [vmem:[%s3774_s3 + $0xd0] sm:$0xff]  ;;  %v1726_v2 = vld [vmem:[%s3774_s3 + $0xd8] sm:$0xff]  ;;  %v366_v22 = vsub.s32 %v363_v19, %v365_v20 }
  0x14   : > { %2585 = vmatprep.subr.bf16.mxu1 %v2584_v42  ;;  %v2592_v0 = vpack.c.bf16 %v1724_v63, %v1723_v62  ;;  %v2596_v3 = vpack.c.bf16 %v1726_v2, %v1725_v1  ;;  %v1727_v4 = vld [vmem:[%s3774_s3 + $0xe0] sm:$0xff]  ;;  %v1728_v5 = vld [vmem:[%s3774_s3 + $0xe8] sm:$0xff]  ;;  %v1729_v7 = vld [vmem:[%s3774_s3 + $0xf0] sm:$0xff] }
  0x15   : > { %2559 = vmatpush1.bf16.msra.mxu0 %v2558_v29  ;;  %v2600_v6 = vpack.c.bf16 %v1728_v5, %v1727_v4  ;;  %v1730_v8 = vld [vmem:[%s3774_s3 + $0xf8] sm:$0xff]  ;;  %v388_v10 = vld [vmem:[%s3774_s3] sm:$0xff]  ;;  %v389_v11 = vld [vmem:[%s3774_s3 + $0x8] sm:$0xff] }
  0x16   : > { %2561 = vmatprep.subr.bf16.mxu0 %v2560_v33  ;;  %v2604_v9 = vpack.c.bf16 %v1730_v8, %v1729_v7  ;;  %v2608_v12 = vpack.c.bf16 %v389_v11, %v388_v10  ;;  %v1765_v13 = vld [vmem:[%s3774_s3 + $0x200] sm:$0xff]  ;;  %v1766_v14 = vld [vmem:[%s3774_s3 + $0x208] sm:$0xff]  ;;  %v390_v29 = vld [vmem:[%s3774_s3 + $0x10] sm:$0xff] }
  0x17   : > { %2587 = vmatpush3.bf16.msra.mxu1 %v2584_v42  ;;  %v2672_v15 = vpack.c.bf16 %v1766_v14, %v1765_v13  ;;  %v1714_v26 = vld [vmem:[%s3773_s2] ss:$0 sm:$0xff]  ;;  %v391_v30 = vld [vmem:[%s3774_s3 + $0x18] sm:$0xff]  ;;  %v393_v35 = vld [vmem:[%s3774_s3 + $0x28] sm:$0xff] }
  0x18   : > { %2589 = vmatprep.subr.bf16.mxu1 %v2588_v50  ;;  %v2612_v33 = vpack.c.bf16 %v391_v30, %v390_v29  ;;  %v392_v34 = vld [vmem:[%s3774_s3 + $0x20] sm:$0xff]  ;;  %v394_v37 = vld [vmem:[%s3774_s3 + $0x30] sm:$0xff]  ;;  %v395_v38 = vld [vmem:[%s3774_s3 + $0x38] sm:$0xff] }
  0x19   : > { %2563 = vmatpush1.bf16.msra.mxu0 %v2562_v40  ;;  %v2616_v36 = vpack.c.bf16 %v393_v35, %v392_v34  ;;  %v2620_v40 = vpack.c.bf16 %v395_v38, %v394_v37  ;;  %v396_v41 = vld [vmem:[%s3774_s3 + $0x40] sm:$0xff]  ;;  %v397_v42 = vld [vmem:[%s3774_s3 + $0x48] sm:$0xff]  ;;  %v398_v44 = vld [vmem:[%s3774_s3 + $0x50] sm:$0xff] }
  0x1a   : > { %2565 = vmatprep.subr.bf16.mxu0 %v2564_v43  ;;  %v2624_v43 = vpack.c.bf16 %v397_v42, %v396_v41  ;;  %v399_v45 = vld [vmem:[%s3774_s3 + $0x58] sm:$0xff]  ;;  %v400_v47 = vld [vmem:[%s3774_s3 + $0x60] sm:$0xff]  ;;  %v401_v48 = vld [vmem:[%s3774_s3 + $0x68] sm:$0xff] }
  0x1b   : > { %2591 = vmatpush3.bf16.msra.mxu1 %v2588_v50  ;;  %v2628_v46 = vpack.c.bf16 %v399_v45, %v398_v44  ;;  %v402_v50 = vld [vmem:[%s3774_s3 + $0x70] sm:$0xff]  ;;  %v1731_v53 = vld [vmem:[%s3774_s3 + $0x100] sm:$0xff]  ;;  %v1732_v54 = vld [vmem:[%s3774_s3 + $0x108] sm:$0xff] }
  0x1c   : > { %2593 = vmatprep.subr.bf16.mxu1 %v2592_v0  ;;  %v2640_v55 = vpack.c.bf16 %v1732_v54, %v1731_v53  ;;  %v1738_v1 = vld [vmem:[%s3774_s3 + $0x138] sm:$0xff]  ;;  %v1740_v4 = vld [vmem:[%s3774_s3 + $0x148] sm:$0xff]  ;;  %v1767_v16 = vld [vmem:[%s3774_s3 + $0x210] sm:$0xff] }
  0x1d   : > { %2567 = vmatpush1.bf16.msra.mxu0 %v2566_v49  ;;  %v2632_v49 = vpack.c.bf16 %v401_v48, %v400_v47  ;;  %v1742_v7 = vld [vmem:[%s3774_s3 + $0x158] sm:$0xff]  ;;  %v1744_v10 = vld [vmem:[%s3774_s3 + $0x168] sm:$0xff]  ;;  %v1769_v19 = vld [vmem:[%s3774_s3 + $0x220] sm:$0xff] }
  0x1e   : > { %2569 = vmatprep.subr.bf16.mxu0 %v2568_v51  ;;  %v403_v51 = vld [vmem:[%s3774_s3 + $0x78] sm:$0xff]  ;;  %v1770_v20 = vld [vmem:[%s3774_s3 + $0x228] sm:$0xff]  ;;  %v1779_v34 = vld [vmem:[%s3774_s3 + $0x270] sm:$0xff] }
  0x1f   : > { %2595 = vmatpush3.bf16.msra.mxu1 %v2592_v0  ;;  %v2636_v52 = vpack.c.bf16 %v403_v51, %v402_v50  ;;  %v1737_v0 = vld [vmem:[%s3774_s3 + $0x130] sm:$0xff]  ;;  %v1746_v13 = vld [vmem:[%s3774_s3 + $0x178] sm:$0xff]  ;;  %v1749_v37 = vld [vmem:[%s3774_s3 + $0x180] sm:$0xff] }
  0x20   : > { %2597 = vmatprep.subr.bf16.mxu1 %v2596_v3  ;;  %v2652_v2 = vpack.c.bf16 %v1738_v1, %v1737_v0  ;;  %v1768_v17 = vld [vmem:[%s3774_s3 + $0x218] sm:$0xff]  ;;  %v1750_v38 = vld [vmem:[%s3774_s3 + $0x188] sm:$0xff]  ;;  %v1748_v45 = vld [vmem:[%s3776_s5] ss:$0 sm:$0xff] }
  0x21   : > { %2571 = vmatpush1.bf16.msra.mxu0 %v2570_v56  ;;  %v1733_v56 = vld [vmem:[%s3774_s3 + $0x110] sm:$0xff]  ;;  %v2676_v18 = vpack.c.bf16 %v1768_v17, %v1767_v16  ;;  %v1776_v29 = vld [vmem:[%s3774_s3 + $0x258] sm:$0xff]  ;;  %v1818_v41 = vld [vmem:[%s3774_s3 + $0x388] sm:$0xff] }
  0x22   : > { %2573 = vmatprep.subr.bf16.mxu0 %v2572_v57  ;;  %v1734_v57 = vld [vmem:[%s3774_s3 + $0x118] sm:$0xff]  ;;  %v1753_v0 = vld [vmem:[%s3774_s3 + $0x1a0] sm:$0xff]  ;;  %v1754_v1 = vld [vmem:[%s3774_s3 + $0x1a8] sm:$0xff] }
  0x23   : > { %2599 = vmatpush3.bf16.msra.mxu1 %v2596_v3  ;;  %v2644_v58 = vpack.c.bf16 %v1734_v57, %v1733_v56  ;;  %v1739_v3 = vld [vmem:[%s3774_s3 + $0x140] sm:$0xff]  ;;  %v1780_v35 = vld [vmem:[%s3774_s3 + $0x278] sm:$0xff]  ;;  %v1763_v16 = vld [vmem:[%s3774_s3 + $0x1f0] sm:$0xff] }
  0x24   : > { %2601 = vmatprep.subr.bf16.mxu1 %v2600_v6  ;;  %v2656_v5 = vpack.c.bf16 %v1740_v4, %v1739_v3  ;;  %v1755_v3 = vld [vmem:[%s3774_s3 + $0x1b0] sm:$0xff]  ;;  %v1756_v4 = vld [vmem:[%s3774_s3 + $0x1b8] sm:$0xff] }
  0x25   : > { %2575 = vmatpush1.bf16.msra.mxu0 %v2574_v60  ;;  %v1735_v60 = vld [vmem:[%s3774_s3 + $0x120] sm:$0xff]  ;;  %v1764_v17 = vld [vmem:[%s3774_s3 + $0x1f8] sm:$0xff] }
  0x26   : > { %2673 = vmatprep.subr.bf16.mxu0 %v2672_v15 }
  0x27   : > { %2603 = vmatpush3.bf16.msra.mxu1 %v2600_v6  ;;  %v1741_v6 = vld [vmem:[%s3774_s3 + $0x150] sm:$0xff] }
  0x28   : > { %349 = vmatmul.mubr.f32.vlgmr.msra.gmra.mrb[0].mxu0 %v251_v61  ;;  %2605 = vmatprep.subr.bf16.mxu1 %v2604_v9  ;;  %v1736_v61 = vld [vmem:[%s3774_s3 + $0x128] sm:$0xff]  ;;  %v2660_v8 = vpack.c.bf16 %v1742_v7, %v1741_v6  ;;  %v2716_v6 = vpack.c.bf16 %v1756_v4, %v1755_v3  ;;  %v1757_v7 = vld [vmem:[%s3774_s3 + $0x1c0] sm:$0xff] }
  0x29   : > { %2675 = vmatpush3.bf16.msra.mxu0 %v2672_v15  ;;  %v2648_v63 = vpack.c.bf16 %v1736_v61, %v1735_v60  ;;  %v1752_v60 = vld [vmem:[%s3774_s3 + $0x198] sm:$0xff]  ;;  %v1801_v3 = vld [vmem:[%s3774_s3 + $0x300] sm:$0xff]  ;;  %v1802_v4 = vld [vmem:[%s3774_s3 + $0x308] sm:$0xff] }
  0x2a   : > { %2677 = vmatprep.subr.bf16.mxu0 %v2676_v18 }
  0x2b   : > { %2607 = vmatpush3.bf16.msra.mxu1 %v2604_v9  ;;  %v1743_v9 = vld [vmem:[%s3774_s3 + $0x160] sm:$0xff] }
  0x2c   : > { %2609 = vmatprep.subr.bf16.mxu1 %v2608_v12  ;;  %v2664_v11 = vpack.c.bf16 %v1744_v10, %v1743_v9  ;;  %v1759_v10 = vld [vmem:[%s3774_s3 + $0x1d0] sm:$0xff] }
  0x2d   : > { %2679 = vmatpush3.bf16.msra.mxu0 %v2676_v18  ;;  %v2732_v18 = vpack.c.bf16 %v1764_v17, %v1763_v16 }
  0xfb   : > { %v350_v21 = vpop.f32.mrb[0].mxu0 }
  0xfc   : > { %v352_v23 = vpop.f32.mrb[1].mxu0 }
  0xfd   : > { %v357_v24 = vcombine.low %v350_v21, %v352_v23  ;;  %v358_v25 = vcombine.high %v350_v21, %v352_v23  ;;  %v2680_v21 = vpack.c.bf16 %v1770_v20, %v1769_v19  ;;  %v1772_v23 = vld [vmem:[%s3774_s3 + $0x238] sm:$0xff]  ;;  %v1781_v19 = vld [vmem:[%s3774_s3 + $0x280] sm:$0xff]  ;;  %v1782_v20 = vld [vmem:[%s3774_s3 + $0x288] sm:$0xff] }
  0xff   : > { %v367_v27 = vrot.slane %v357_v24, %v366_v22  ;;  %v374_v28 = vrot.slane %v358_v25, %v366_v22  ;;  %2681 = vmatprep.subr.bf16.mxu0 %v2680_v21  ;;  %v1771_v22 = vld [vmem:[%s3774_s3 + $0x230] sm:$0xff]  ;;  %v1773_v25 = vld [vmem:[%s3774_s3 + $0x240] sm:$0xff] }
 0x100   : > { %2683 = vmatpush3.bf16.msra.mxu0 %v2680_v21  ;;  %v2684_v24 = vpack.c.bf16 %v1772_v23, %v1771_v22  ;;  %v2736_v21 = vpack.c.bf16 %v1782_v20, %v1781_v19  ;;  %v1783_v22 = vld [vmem:[%s3774_s3 + $0x290] sm:$0xff]  ;;  %v1784_v23 = vld [vmem:[%s3774_s3 + $0x298] sm:$0xff] }
 0x101   : > { %v382_v31 = vadd.f32 %v1714_v26, %v367_v27  ;;  %v383_v32 = vadd.f32 %v1714_v26, %v374_v28  ;;  %v1774_v26 = vld [vmem:[%s3774_s3 + $0x248] sm:$0xff]  ;;  %v1775_v28 = vld [vmem:[%s3774_s3 + $0x250] sm:$0xff] }
 0x102   : > { %2685 = vmatprep.subr.bf16.mxu0 %v2684_v24  ;;  %v2688_v27 = vpack.c.bf16 %v1774_v26, %v1773_v25  ;;  %v2692_v30 = vpack.c.bf16 %v1776_v29, %v1775_v28  ;;  %v1785_v26 = vld [vmem:[%s3774_s3 + $0x2a0] sm:$0xff] }
 0x103   : > { %384 = vst [vmem:[#allocation2 + $0x1] sm:$0xff] %v382_v31  ;;  %385 = vst [vmem:[#allocation2 + $0x9] sm:$0xff] %v383_v32  ;;  %2156 = vmatprep.mubr.f32.mxu1 %v382_v31  ;;  %v1777_v31 = vld [vmem:[%s3774_s3 + $0x260] sm:$0xff] }
 0x104   : > { %2157 = vmatmul.mubr.f32.vlgmr.msra.gmra.mrb[0].mxu1 %v383_v32  ;;  %2687 = vmatpush3.bf16.msra.mxu0 %v2684_v24  ;;  %v1778_v32 = vld [vmem:[%s3774_s3 + $0x268] sm:$0xff]  ;;  %v2740_v24 = vpack.c.bf16 %v1784_v23, %v1783_v22 }
 0x105   : > { %2611 = vmatpush3.bf16.msra.mxu1 %v2608_v12  ;;  %v1745_v12 = vld [vmem:[%s3774_s3 + $0x170] sm:$0xff]  ;;  %2689 = vmatprep.subr.bf16.mxu0 %v2688_v27 }
 0x106   : > { %2613 = vmatprep.subr.bf16.mxu1 %v2612_v33  ;;  %v2668_v14 = vpack.c.bf16 %v1746_v13, %v1745_v12  ;;  %v1761_v13 = vld [vmem:[%s3774_s3 + $0x1e0] sm:$0xff] }
 0x108   : > { %2691 = vmatpush3.bf16.msra.mxu0 %v2688_v27  ;;  %v1786_v27 = vld [vmem:[%s3774_s3 + $0x2a8] sm:$0xff] }
 0x109   : > { %2615 = vmatpush3.bf16.msra.mxu1 %v2612_v33  ;;  %2693 = vmatprep.subr.bf16.mxu0 %v2692_v30  ;;  %v2696_v33 = vpack.c.bf16 %v1778_v32, %v1777_v31  ;;  %v2744_v29 = vpack.c.bf16 %v1786_v27, %v1785_v26  ;;  %v1788_v31 = vld [vmem:[%s3774_s3 + $0x2b8] sm:$0xff] }
 0x10a   : > { %v386_v39 = vld [vmem:[#allocation2] sm:$0xff]  ;;  %2617 = vmatprep.subr.bf16.mxu1 %v2616_v36  ;;  %v387_v59 = vld [vmem:[#allocation2 + $0x8] sm:$0xff]  ;;  %v1804_v26 = vld [vmem:[%s3774_s3 + $0x318] sm:$0xff] }
 0x10b   : > { %2191 = vmatprep.mubr.f32.mxu1 %v386_v39  ;;  %v573_v62 = vld [vmem:[#allocation2 + $0x2] sm:$0xff]  ;;  %v574_v15 = vld [vmem:[#allocation2 + $0xa] sm:$0xff]  ;;  %v2704_v39 = vpack.c.bf16 %v1750_v38, %v1749_v37  ;;  %v1792_v37 = vld [vmem:[%s3774_s3 + $0x2d8] sm:$0xff] }
 0x10c   : > { %2695 = vmatpush3.bf16.msra.mxu0 %v2692_v30  ;;  %v1787_v30 = vld [vmem:[%s3774_s3 + $0x2b0] sm:$0xff] }
 0x10d   : > { %2619 = vmatpush3.bf16.msra.mxu1 %v2616_v36  ;;  %2697 = vmatprep.subr.bf16.mxu0 %v2696_v33  ;;  %v2700_v36 = vpack.c.bf16 %v1780_v35, %v1779_v34  ;;  %v2748_v32 = vpack.c.bf16 %v1788_v31, %v1787_v30  ;;  %v1790_v34 = vld [vmem:[%s3774_s3 + $0x2c8] sm:$0xff]  ;;  %v1805_v30 = vld [vmem:[%s3774_s3 + $0x320] sm:$0xff] }
 0x10e   : > { %2621 = vmatprep.subr.bf16.mxu1 %v2620_v40  ;;  %v1806_v31 = vld [vmem:[%s3774_s3 + $0x328] sm:$0xff] }
 0x110   : > { %2699 = vmatpush3.bf16.msra.mxu0 %v2696_v33  ;;  %v1789_v33 = vld [vmem:[%s3774_s3 + $0x2c0] sm:$0xff] }
 0x111   : > { %2623 = vmatpush3.bf16.msra.mxu1 %v2620_v40  ;;  %2701 = vmatprep.subr.bf16.mxu0 %v2700_v36  ;;  %v1817_v40 = vld [vmem:[%s3774_s3 + $0x380] sm:$0xff]  ;;  %v2752_v35 = vpack.c.bf16 %v1790_v34, %v1789_v33  ;;  %v1807_v33 = vld [vmem:[%s3774_s3 + $0x330] sm:$0xff]  ;;  %v1808_v34 = vld [vmem:[%s3774_s3 + $0x338] sm:$0xff] }
 0x112   : > { %2625 = vmatprep.subr.bf16.mxu1 %v2624_v43  ;;  %v2768_v42 = vpack.c.bf16 %v1818_v41, %v1817_v40  ;;  %v1794_v40 = vld [vmem:[%s3774_s3 + $0x2e8] sm:$0xff] }
 0x114   : > { %2703 = vmatpush3.bf16.msra.mxu0 %v2700_v36  ;;  %v1791_v36 = vld [vmem:[%s3774_s3 + $0x2d0] sm:$0xff] }
 0x115   : > { %2627 = vmatpush3.bf16.msra.mxu1 %v2624_v43  ;;  %2705 = vmatprep.subr.bf16.mxu0 %v2704_v39  ;;  %v1747_v43 = vld [vmem:[%s3775_s4] ss:$0 sm:$0xff]  ;;  %v2756_v38 = vpack.c.bf16 %v1792_v37, %v1791_v36  ;;  %v2812_v36 = vpack.c.bf16 %v1808_v34, %v1807_v33  ;;  %v1854_v34 = vld [vmem:[%s3774_s3 + $0x488] sm:$0xff] }
 0x116   : > { %2629 = vmatprep.subr.bf16.mxu1 %v2628_v46  ;;  %v1809_v37 = vld [vmem:[%s3774_s3 + $0x340] sm:$0xff] }
 0x117   : > { %v1853_v33 = vld [vmem:[%s3774_s3 + $0x480] sm:$0xff] }
 0x119   : > { %2631 = vmatpush3.bf16.msra.mxu1 %v2628_v46 }
 0x11a   : > { %2633 = vmatprep.subr.bf16.mxu1 %v2632_v49 }
 0x11d   : > { %2635 = vmatpush3.bf16.msra.mxu1 %v2632_v49 }
 0x11e   : > { %2637 = vmatprep.subr.bf16.mxu1 %v2636_v52 }
 0x121   : > { %2639 = vmatpush3.bf16.msra.mxu1 %v2636_v52 }
 0x122   : > { %2641 = vmatprep.subr.bf16.mxu1 %v2640_v55 }
 0x124   : > { %2192 = vmatmul.mubr.f32.vlgmr.msra.gmra.mrb[0].mxu1 %v387_v59  ;;  %v1751_v59 = vld [vmem:[%s3774_s3 + $0x190] sm:$0xff] }
 0x125   : > { %2643 = vmatpush3.bf16.msra.mxu1 %v2640_v55  ;;  %2226 = vmatprep.mubr.f32.mxu1 %v573_v62 }
 0x126   : > { %2645 = vmatprep.subr.bf16.mxu1 %v2644_v58 }
 0x129   : > { %2647 = vmatpush3.bf16.msra.mxu1 %v2644_v58 }
 0x12a   : > { %2649 = vmatprep.subr.bf16.mxu1 %v2648_v63 }
 0x12d   : > { %2651 = vmatpush3.bf16.msra.mxu1 %v2648_v63  ;;  %v2708_v63 = vpack.c.bf16 %v1752_v60, %v1751_v59  ;;  %v1828_v59 = vld [vmem:[%s3774_s3 + $0x3d8] sm:$0xff] }
 0x12e   : > { %2653 = vmatprep.subr.bf16.mxu1 %v2652_v2 }
 0x131   : > { %2655 = vmatpush3.bf16.msra.mxu1 %v2652_v2  ;;  %v2712_v2 = vpack.c.bf16 %v1754_v1, %v1753_v0  ;;  %v1831_v0 = vld [vmem:[%s3774_s3 + $0x3f0] sm:$0xff]  ;;  %v1832_v1 = vld [vmem:[%s3774_s3 + $0x3f8] sm:$0xff] }
 0x132   : > { %2657 = vmatprep.subr.bf16.mxu1 %v2656_v5 }
 0x135   : > { %2659 = vmatpush3.bf16.msra.mxu1 %v2656_v5 }
 0x136   : > { %2661 = vmatprep.subr.bf16.mxu1 %v2660_v8 }
 0x139   : > { %2663 = vmatpush3.bf16.msra.mxu1 %v2660_v8  ;;  %v1758_v8 = vld [vmem:[%s3774_s3 + $0x1c8] sm:$0xff] }
 0x13a   : > { %2665 = vmatprep.subr.bf16.mxu1 %v2664_v11  ;;  %v2720_v9 = vpack.c.bf16 %v1758_v8, %v1757_v7  ;;  %v1870_v7 = vld [vmem:[%s3774_s3 + $0x508] sm:$0xff] }
 0x13d   : > { %2667 = vmatpush3.bf16.msra.mxu1 %v2664_v11  ;;  %v1760_v11 = vld [vmem:[%s3774_s3 + $0x1d8] sm:$0xff] }
 0x13e   : > { %2669 = vmatprep.subr.bf16.mxu1 %v2668_v14  ;;  %v2724_v12 = vpack.c.bf16 %v1760_v11, %v1759_v10  ;;  %v1800_v11 = vld [vmem:[%s3776_s5 + $0x1] ss:$0 sm:$0xff] }
 0x141   : > { %2671 = vmatpush3.bf16.msra.mxu1 %v2668_v14  ;;  %v1762_v14 = vld [vmem:[%s3774_s3 + $0x1e8] sm:$0xff] }
 0x142   : > { %2769 = vmatprep.subr.bf16.mxu1 %v2768_v42 }
 0x144   : > { %2227 = vmatmul.mubr.f32.vlgmr.msra.gmra.mrb[0].mxu1 %v574_v15  ;;  %v2728_v15 = vpack.c.bf16 %v1762_v14, %v1761_v13 }
 0x145   : > { %2771 = vmatpush3.bf16.msra.mxu1 %v2768_v42  ;;  %v1795_v42 = vld [vmem:[%s3774_s3 + $0x2f0] sm:$0xff] }
 0x217   : > { %v2228_v44 = vpop.f32.mrb[0].mxu1 }
 0x218   : > { %v677_v46 = vmul.f32 %v2228_v44, %v1747_v43  ;;  %v658_v47 = vpop.f32.mrb[1].mxu1 }
 0x219   : > { %v676_v48 = vmul.f32 %v1747_v43, %v658_v47  ;;  %v1796_v43 = vld [vmem:[%s3774_s3 + $0x2f8] sm:$0xff] }
 0x21a   : > { %v686_v49 = vadd.f32 %v1748_v45, %v677_v46  ;;  %v2764_v44 = vpack.c.bf16 %v1796_v43, %v1795_v42  ;;  %v1819_v46 = vld [vmem:[%s3774_s3 + $0x390] sm:$0xff]  ;;  %v1820_v47 = vld [vmem:[%s3774_s3 + $0x398] sm:$0xff]  ;;  %v1813_v43 = vld [vmem:[%s3774_s3 + $0x360] sm:$0xff] }
 0x21b   : > { %v685_v50 = vadd.f32 %v1748_v45, %v676_v48  ;;  %v2772_v48 = vpack.c.bf16 %v1820_v47, %v1819_v46  ;;  %v1815_v46 = vld [vmem:[%s3774_s3 + $0x370] sm:$0xff]  ;;  %v1816_v47 = vld [vmem:[%s3774_s3 + $0x378] sm:$0xff] }
 0x21c   : > { %v690_v51 = vmul.f32 0.70710677, %v686_v49  ;;  %v688_v55 = vmul.f32 0.5, %v686_v49  ;;  %v1821_v49 = vld [vmem:[%s3774_s3 + $0x3a0] sm:$0xff] }
 0x21d   : > { %v689_v52 = vmul.f32 0.70710677, %v685_v50  ;;  %v687_v57 = vmul.f32 0.5, %v685_v50  ;;  %2773 = vmatprep.subr.bf16.mxu1 %v2772_v48  ;;  %v1822_v50 = vld [vmem:[%s3774_s3 + $0x3a8] sm:$0xff] }
 0x21e   : > { %2986 = verf.f32 %v690_v51  ;;  %2775 = vmatpush3.bf16.msra.mxu1 %v2772_v48  ;;  %v2776_v51 = vpack.c.bf16 %v1822_v50, %v1821_v49  ;;  %v2828_v48 = vpack.c.bf16 %v1816_v47, %v1815_v46  ;;  %v1833_v49 = vld [vmem:[%s3774_s3 + $0x400] sm:$0xff]  ;;  %v1834_v50 = vld [vmem:[%s3774_s3 + $0x408] sm:$0xff] }
 0x21f   : > { %2988 = verf.f32 %v689_v52  ;;  %v1823_v52 = vld [vmem:[%s3774_s3 + $0x3b0] sm:$0xff] }
 0x220   : > { %2777 = vmatprep.subr.bf16.mxu1 %v2776_v51 }
 0x222   : > { %2779 = vmatpush3.bf16.msra.mxu1 %v2776_v51  ;;  %v2832_v51 = vpack.c.bf16 %v1834_v50, %v1833_v49 }
 0x228   : > { %v2987_v53 = vpop.eup %2986 }
 0x229   : > { %v2989_v54 = vpop.eup %2988  ;;  %v694_v56 = vadd.f32 1.0, %v2987_v53  ;;  %v1824_v53 = vld [vmem:[%s3774_s3 + $0x3b8] sm:$0xff] }
 0x22a   : > { %v693_v58 = vadd.f32 1.0, %v2989_v54  ;;  %v2780_v54 = vpack.c.bf16 %v1824_v53, %v1823_v52  ;;  %v1835_v52 = vld [vmem:[%s3774_s3 + $0x410] sm:$0xff]  ;;  %v1836_v53 = vld [vmem:[%s3774_s3 + $0x418] sm:$0xff] }
 0x22b   : > { %v696_v61 = vmul.f32 %v694_v56, %v688_v55  ;;  %v1825_v55 = vld [vmem:[%s3774_s3 + $0x3c0] sm:$0xff]  ;;  %v1826_v56 = vld [vmem:[%s3774_s3 + $0x3c8] sm:$0xff] }
 0x22c   : > { %v695_v62 = vmul.f32 %v693_v58, %v687_v57  ;;  %2781 = vmatprep.subr.bf16.mxu1 %v2780_v54  ;;  %v2784_v57 = vpack.c.bf16 %v1826_v56, %v1825_v55  ;;  %v1827_v58 = vld [vmem:[%s3774_s3 + $0x3d0] sm:$0xff]  ;;  %v1837_v56 = vld [vmem:[%s3774_s3 + $0x420] sm:$0xff] }
 0x22d   : > { %698 = vst [vmem:[#allocation2 + $0x9] sm:$0xff] %v696_v61  ;;  %2783 = vmatpush3.bf16.msra.mxu1 %v2780_v54  ;;  %v2788_v60 = vpack.c.bf16 %v1828_v59, %v1827_v58  ;;  %v2836_v54 = vpack.c.bf16 %v1836_v53, %v1835_v52  ;;  %v1855_v52 = vld [vmem:[%s3774_s3 + $0x490] sm:$0xff]  ;;  %v1856_v53 = vld [vmem:[%s3774_s3 + $0x498] sm:$0xff] }
 0x22e   : > { %697 = vst [vmem:[#allocation2 + $0x1] sm:$0xff] %v695_v62  ;;  %2261 = vmatprep.mubr.f32.mxu0 %v695_v62  ;;  %2785 = vmatprep.subr.bf16.mxu1 %v2784_v57  ;;  %v1830_v62 = vld [vmem:[%s3774_s3 + $0x3e8] sm:$0xff] }
 0x22f   : > { %2262 = vmatmul.mubr.f32.vlgmr.msra.gmra.mrb[2].mxu0 %v696_v61  ;;  %v1829_v61 = vld [vmem:[%s3774_s3 + $0x3e0] sm:$0xff] }
 0x230   : > { %2707 = vmatpush3.bf16.msra.mxu0 %v2704_v39  ;;  %v1793_v39 = vld [vmem:[%s3774_s3 + $0x2e0] sm:$0xff] }
 0x231   : > { %2709 = vmatprep.subr.bf16.mxu0 %v2708_v63  ;;  %v2760_v41 = vpack.c.bf16 %v1794_v40, %v1793_v39  ;;  %2787 = vmatpush3.bf16.msra.mxu1 %v2784_v57  ;;  %v1811_v40 = vld [vmem:[%s3774_s3 + $0x350] sm:$0xff]  ;;  %v1838_v57 = vld [vmem:[%s3774_s3 + $0x428] sm:$0xff] }
 0x232   : > { %2789 = vmatprep.subr.bf16.mxu1 %v2788_v60  ;;  %v2840_v59 = vpack.c.bf16 %v1838_v57, %v1837_v56  ;;  %v2900_v56 = vpack.c.bf16 %v1856_v53, %v1855_v52  ;;  %v1857_v57 = vld [vmem:[%s3774_s3 + $0x4a0] sm:$0xff] }
 0x234   : > { %2711 = vmatpush3.bf16.msra.mxu0 %v2708_v63  ;;  %v888_v45 = vld [vmem:[#allocation2 + $0xa] sm:$0xff]  ;;  %v2792_v63 = vpack.c.bf16 %v1830_v62, %v1829_v61  ;;  %v1840_v61 = vld [vmem:[%s3774_s3 + $0x438] sm:$0xff] }
 0x235   : > { %v699_v5 = vld [vmem:[#allocation2] sm:$0xff]  ;;  %2713 = vmatprep.subr.bf16.mxu0 %v2712_v2  ;;  %v700_v25 = vld [vmem:[#allocation2 + $0x8] sm:$0xff]  ;;  %2791 = vmatpush3.bf16.msra.mxu1 %v2788_v60  ;;  %v1839_v60 = vld [vmem:[%s3774_s3 + $0x430] sm:$0xff] }
 0x236   : > { %2296 = vmatprep.mubr.f32.mxu0 %v699_v5  ;;  %v887_v28 = vld [vmem:[#allocation2 + $0x2] sm:$0xff]  ;;  %2793 = vmatprep.subr.bf16.mxu1 %v2792_v63  ;;  %v2800_v5 = vpack.c.bf16 %v1802_v4, %v1801_v3  ;;  %v2844_v62 = vpack.c.bf16 %v1840_v61, %v1839_v60  ;;  %v1844_v3 = vld [vmem:[%s3774_s3 + $0x458] sm:$0xff]  ;;  %v1859_v60 = vld [vmem:[%s3774_s3 + $0x4b0] sm:$0xff] }
 0x237   : > { %v1860_v61 = vld [vmem:[%s3774_s3 + $0x4b8] sm:$0xff] }
 0x238   : > { %2715 = vmatpush3.bf16.msra.mxu0 %v2712_v2  ;;  %v2796_v2 = vpack.c.bf16 %v1832_v1, %v1831_v0  ;;  %v1842_v0 = vld [vmem:[%s3774_s3 + $0x448] sm:$0xff] }
 0x239   : > { %2717 = vmatprep.subr.bf16.mxu0 %v2716_v6  ;;  %2795 = vmatpush3.bf16.msra.mxu1 %v2792_v63  ;;  %v1841_v63 = vld [vmem:[%s3774_s3 + $0x440] sm:$0xff] }
 0x23a   : > { %2797 = vmatprep.subr.bf16.mxu1 %v2796_v2  ;;  %v2848_v1 = vpack.c.bf16 %v1842_v0, %v1841_v63  ;;  %v2908_v63 = vpack.c.bf16 %v1860_v61, %v1859_v60  ;;  %v1861_v0 = vld [vmem:[%s3774_s3 + $0x4c0] sm:$0xff] }
 0x23c   : > { %2719 = vmatpush3.bf16.msra.mxu0 %v2716_v6  ;;  %v1869_v6 = vld [vmem:[%s3774_s3 + $0x500] sm:$0xff] }
 0x23d   : > { %2721 = vmatprep.subr.bf16.mxu0 %v2720_v9  ;;  %2799 = vmatpush3.bf16.msra.mxu1 %v2796_v2  ;;  %v2864_v8 = vpack.c.bf16 %v1870_v7, %v1869_v6  ;;  %v1843_v2 = vld [vmem:[%s3774_s3 + $0x450] sm:$0xff]  ;;  %v1846_v6 = vld [vmem:[%s3774_s3 + $0x468] sm:$0xff] }
 0x23e   : > { %2801 = vmatprep.subr.bf16.mxu1 %v2800_v5  ;;  %v2852_v4 = vpack.c.bf16 %v1844_v3, %v1843_v2  ;;  %v1863_v3 = vld [vmem:[%s3774_s3 + $0x4d0] sm:$0xff] }
 0x240   : > { %2723 = vmatpush3.bf16.msra.mxu0 %v2720_v9  ;;  %v1798_v9 = vld [vmem:[%s3775_s4 + $0x1] ss:$0 sm:$0xff] }
 0x241   : > { %2725 = vmatprep.subr.bf16.mxu0 %v2724_v12 }
 0x244   : > { %2727 = vmatpush3.bf16.msra.mxu0 %v2724_v12 }
 0x245   : > { %2729 = vmatprep.subr.bf16.mxu0 %v2728_v15 }
 0x248   : > { %2731 = vmatpush3.bf16.msra.mxu0 %v2728_v15 }
 0x249   : > { %2733 = vmatprep.subr.bf16.mxu0 %v2732_v18 }
 0x24c   : > { %2735 = vmatpush3.bf16.msra.mxu0 %v2732_v18 }
 0x24d   : > { %2737 = vmatprep.subr.bf16.mxu0 %v2736_v21 }
 0x24f   : > { %2297 = vmatmul.mubr.f32.vlgmr.msra.gmra.mrb[2].mxu0 %v700_v25  ;;  %v1803_v25 = vld [vmem:[%s3774_s3 + $0x310] sm:$0xff] }
 0x250   : > { %2739 = vmatpush3.bf16.msra.mxu0 %v2736_v21  ;;  %2331 = vmatprep.mubr.f32.mxu0 %v887_v28 }
 0x251   : > { %2741 = vmatprep.subr.bf16.mxu0 %v2740_v24 }
 0x254   : > { %2743 = vmatpush3.bf16.msra.mxu0 %v2740_v24 }
 0x255   : > { %2745 = vmatprep.subr.bf16.mxu0 %v2744_v29 }
 0x258   : > { %2747 = vmatpush3.bf16.msra.mxu0 %v2744_v29  ;;  %v2804_v29 = vpack.c.bf16 %v1804_v26, %v1803_v25  ;;  %v1880_v25 = vld [vmem:[%s3774_s3 + $0x558] sm:$0xff] }
 0x259   : > { %2749 = vmatprep.subr.bf16.mxu0 %v2748_v32 }
 0x25c   : > { %2751 = vmatpush3.bf16.msra.mxu0 %v2748_v32  ;;  %v2808_v32 = vpack.c.bf16 %v1806_v31, %v1805_v30  ;;  %v1883_v30 = vld [vmem:[%s3774_s3 + $0x570] sm:$0xff]  ;;  %v1884_v31 = vld [vmem:[%s3774_s3 + $0x578] sm:$0xff] }
 0x25d   : > { %2753 = vmatprep.subr.bf16.mxu0 %v2752_v35 }
 0x260   : > { %2755 = vmatpush3.bf16.msra.mxu0 %v2752_v35 }
 0x261   : > { %2757 = vmatprep.subr.bf16.mxu0 %v2756_v38 }
 0x264   : > { %2759 = vmatpush3.bf16.msra.mxu0 %v2756_v38  ;;  %v1810_v38 = vld [vmem:[%s3774_s3 + $0x348] sm:$0xff] }
 0x265   : > { %2761 = vmatprep.subr.bf16.mxu0 %v2760_v41  ;;  %v2816_v39 = vpack.c.bf16 %v1810_v38, %v1809_v37  ;;  %v1852_v38 = vld [vmem:[%s3776_s5 + $0x2] ss:$0 sm:$0xff] }
 0x268   : > { %2763 = vmatpush3.bf16.msra.mxu0 %v2760_v41  ;;  %v1812_v41 = vld [vmem:[%s3774_s3 + $0x358] sm:$0xff] }
 0x269   : > { %2765 = vmatprep.subr.bf16.mxu0 %v2764_v44  ;;  %v2820_v42 = vpack.c.bf16 %v1812_v41, %v1811_v40 }
 0x26c   : > { %2767 = vmatpush3.bf16.msra.mxu0 %v2764_v44  ;;  %v1814_v44 = vld [vmem:[%s3774_s3 + $0x368] sm:$0xff] }
 0x26d   : > { %2865 = vmatprep.subr.bf16.mxu0 %v2864_v8 }
 0x26f   : > { %2332 = vmatmul.mubr.f32.vlgmr.msra.gmra.mrb[2].mxu0 %v888_v45  ;;  %v2824_v45 = vpack.c.bf16 %v1814_v44, %v1813_v43 }
 0x270   : > { %2867 = vmatpush3.bf16.msra.mxu0 %v2864_v8  ;;  %v1847_v8 = vld [vmem:[%s3774_s3 + $0x470] sm:$0xff] }
 0x342   : > { %v2333_v10 = vpop.f32.mrb[2].mxu0 }
 0x343   : > { %v992_v12 = vmul.f32 %v2333_v10, %v1798_v9  ;;  %v972_v13 = vpop.f32.mrb[3].mxu0 }
 0x344   : > { %v991_v14 = vmul.f32 %v1798_v9, %v972_v13  ;;  %v1848_v9 = vld [vmem:[%s3774_s3 + $0x478] sm:$0xff] }
 0x345   : > { %v1002_v15 = vadd.f32 %v1800_v11, %v992_v12  ;;  %v2860_v10 = vpack.c.bf16 %v1848_v9, %v1847_v8  ;;  %v1871_v12 = vld [vmem:[%s3774_s3 + $0x510] sm:$0xff]  ;;  %v1872_v13 = vld [vmem:[%s3774_s3 + $0x518] sm:$0xff] }
 0x346   : > { %v1001_v16 = vadd.f32 %v1800_v11, %v991_v14  ;;  %v2868_v14 = vpack.c.bf16 %v1872_v13, %v1871_v12  ;;  %v1867_v9 = vld [vmem:[%s3774_s3 + $0x4f0] sm:$0xff]  ;;  %v1885_v12 = vld [vmem:[%s3774_s3 + $0x580] sm:$0xff]  ;;  %v1886_v13 = vld [vmem:[%s3774_s3 + $0x588] sm:$0xff] }
 0x347   : > { %v1006_v17 = vmul.f32 0.70710677, %v1002_v15  ;;  %v1004_v21 = vmul.f32 0.5, %v1002_v15  ;;  %v1873_v15 = vld [vmem:[%s3774_s3 + $0x520] sm:$0xff] }
 0x348   : > { %v1005_v18 = vmul.f32 0.70710677, %v1001_v16  ;;  %v1003_v23 = vmul.f32 0.5, %v1001_v16  ;;  %2869 = vmatprep.subr.bf16.mxu0 %v2868_v14  ;;  %v1874_v16 = vld [vmem:[%s3774_s3 + $0x528] sm:$0xff] }
 0x349   : > { %2990 = verf.f32 %v1006_v17  ;;  %2871 = vmatpush3.bf16.msra.mxu0 %v2868_v14  ;;  %v2872_v17 = vpack.c.bf16 %v1874_v16, %v1873_v15  ;;  %v2928_v14 = vpack.c.bf16 %v1886_v13, %v1885_v12  ;;  %v1887_v15 = vld [vmem:[%s3774_s3 + $0x590] sm:$0xff]  ;;  %v1888_v16 = vld [vmem:[%s3774_s3 + $0x598] sm:$0xff] }
 0x34a   : > { %2992 = verf.f32 %v1005_v18  ;;  %v1875_v18 = vld [vmem:[%s3774_s3 + $0x530] sm:$0xff] }
 0x34b   : > { %2873 = vmatprep.subr.bf16.mxu0 %v2872_v17 }
 0x34d   : > { %2875 = vmatpush3.bf16.msra.mxu0 %v2872_v17  ;;  %v2932_v17 = vpack.c.bf16 %v1888_v16, %v1887_v15 }
 0x353   : > { %v2991_v19 = vpop.eup %2990 }
 0x354   : > { %v2993_v20 = vpop.eup %2992  ;;  %v1010_v22 = vadd.f32 1.0, %v2991_v19  ;;  %v1876_v19 = vld [vmem:[%s3774_s3 + $0x538] sm:$0xff] }
 0x355   : > { %v1009_v24 = vadd.f32 1.0, %v2993_v20  ;;  %v2876_v20 = vpack.c.bf16 %v1876_v19, %v1875_v18  ;;  %v1889_v19 = vld [vmem:[%s3774_s3 + $0x5a0] sm:$0xff] }
 0x356   : > { %v1012_v27 = vmul.f32 %v1010_v22, %v1004_v21  ;;  %v1877_v21 = vld [vmem:[%s3774_s3 + $0x540] sm:$0xff]  ;;  %v1878_v22 = vld [vmem:[%s3774_s3 + $0x548] sm:$0xff] }
 0x357   : > { %v1011_v28 = vmul.f32 %v1009_v24, %v1003_v23  ;;  %2877 = vmatprep.subr.bf16.mxu0 %v2876_v20  ;;  %v2880_v23 = vpack.c.bf16 %v1878_v22, %v1877_v21  ;;  %v1879_v24 = vld [vmem:[%s3774_s3 + $0x550] sm:$0xff] }
 0x358   : > { %1014 = vst [vmem:[#allocation2 + $0x9] sm:$0xff] %v1012_v27  ;;  %2879 = vmatpush3.bf16.msra.mxu0 %v2876_v20  ;;  %v2884_v26 = vpack.c.bf16 %v1880_v25, %v1879_v24  ;;  %v1890_v20 = vld [vmem:[%s3774_s3 + $0x5a8] sm:$0xff]  ;;  %v1892_v24 = vld [vmem:[%s3774_s3 + $0x5b8] sm:$0xff] }
 0x359   : > { %1013 = vst [vmem:[#allocation2 + $0x1] sm:$0xff] %v1011_v28  ;;  %2366 = vmatprep.mubr.f32.mxu1 %v1011_v28  ;;  %2881 = vmatprep.subr.bf16.mxu0 %v2880_v23  ;;  %v1882_v28 = vld [vmem:[%s3774_s3 + $0x568] sm:$0xff]  ;;  %v2936_v22 = vpack.c.bf16 %v1890_v20, %v1889_v19 }
 0x35a   : > { %2367 = vmatmul.mubr.f32.vlgmr.msra.gmra.mrb[2].mxu1 %v1012_v27  ;;  %v1881_v27 = vld [vmem:[%s3774_s3 + $0x560] sm:$0xff] }
 0x35b   : > { %2803 = vmatpush3.bf16.msra.mxu1 %v2800_v5  ;;  %v1845_v5 = vld [vmem:[%s3774_s3 + $0x460] sm:$0xff] }
 0x35c   : > { %2805 = vmatprep.subr.bf16.mxu1 %v2804_v29  ;;  %v2856_v7 = vpack.c.bf16 %v1846_v6, %v1845_v5  ;;  %2883 = vmatpush3.bf16.msra.mxu0 %v2880_v23  ;;  %v1865_v6 = vld [vmem:[%s3774_s3 + $0x4e0] sm:$0xff]  ;;  %v1891_v23 = vld [vmem:[%s3774_s3 + $0x5b0] sm:$0xff] }
 0x35d   : > { %2885 = vmatprep.subr.bf16.mxu0 %v2884_v26  ;;  %v2940_v25 = vpack.c.bf16 %v1892_v24, %v1891_v23 }
 0x35f   : > { %2807 = vmatpush3.bf16.msra.mxu1 %v2804_v29  ;;  %v1204_v11 = vld [vmem:[#allocation2 + $0xa] sm:$0xff]  ;;  %v2888_v29 = vpack.c.bf16 %v1882_v28, %v1881_v27 }
 0x360   : > { %v1015_v35 = vld [vmem:[#allocation2] sm:$0xff]  ;;  %2809 = vmatprep.subr.bf16.mxu1 %v2808_v32  ;;  %v1016_v55 = vld [vmem:[#allocation2 + $0x8] sm:$0xff]  ;;  %2887 = vmatpush3.bf16.msra.mxu0 %v2884_v26 }
 0x361   : > { %2401 = vmatprep.mubr.f32.mxu1 %v1015_v35  ;;  %v1203_v58 = vld [vmem:[#allocation2 + $0x2] sm:$0xff]  ;;  %2889 = vmatprep.subr.bf16.mxu0 %v2888_v29  ;;  %v2896_v35 = vpack.c.bf16 %v1854_v34, %v1853_v33 }
 0x362   : > { %v1893_v26 = vld [vmem:[%s3774_s3 + $0x5c0] sm:$0xff]  ;;  %v1894_v27 = vld [vmem:[%s3774_s3 + $0x5c8] sm:$0xff] }
 0x363   : > { %2811 = vmatpush3.bf16.msra.mxu1 %v2808_v32  ;;  %v2892_v32 = vpack.c.bf16 %v1884_v31, %v1883_v30  ;;  %v2944_v28 = vpack.c.bf16 %v1894_v27, %v1893_v26  ;;  %v1896_v30 = vld [vmem:[%s3774_s3 + $0x5d8] sm:$0xff]  ;;  %v1898_v33 = vld [vmem:[%s3774_s3 + $0x5e8] sm:$0xff] }
 0x364   : > { %2813 = vmatprep.subr.bf16.mxu1 %v2812_v36  ;;  %2891 = vmatpush3.bf16.msra.mxu0 %v2888_v29  ;;  %v1895_v29 = vld [vmem:[%s3774_s3 + $0x5d0] sm:$0xff] }
 0x365   : > { %2893 = vmatprep.subr.bf16.mxu0 %v2892_v32  ;;  %v2948_v31 = vpack.c.bf16 %v1896_v30, %v1895_v29 }
 0x367   : > { %2815 = vmatpush3.bf16.msra.mxu1 %v2812_v36  ;;  %v1850_v36 = vld [vmem:[%s3775_s4 + $0x2] ss:$0 sm:$0xff] }
 0x368   : > { %2817 = vmatprep.subr.bf16.mxu1 %v2816_v39  ;;  %2895 = vmatpush3.bf16.msra.mxu0 %v2892_v32  ;;  %v1897_v32 = vld [vmem:[%s3774_s3 + $0x5e0] sm:$0xff] }
 0x369   : > { %2897 = vmatprep.subr.bf16.mxu0 %v2896_v35  ;;  %v2952_v34 = vpack.c.bf16 %v1898_v33, %v1897_v32 }
 0x36b   : > { %2819 = vmatpush3.bf16.msra.mxu1 %v2816_v39 }
 0x36c   : > { %2821 = vmatprep.subr.bf16.mxu1 %v2820_v42 }
 0x36f   : > { %2823 = vmatpush3.bf16.msra.mxu1 %v2820_v42 }
 0x370   : > { %2825 = vmatprep.subr.bf16.mxu1 %v2824_v45 }
 0x373   : > { %2827 = vmatpush3.bf16.msra.mxu1 %v2824_v45 }
 0x374   : > { %2829 = vmatprep.subr.bf16.mxu1 %v2828_v48 }
 0x377   : > { %2831 = vmatpush3.bf16.msra.mxu1 %v2828_v48 }
 0x378   : > { %2833 = vmatprep.subr.bf16.mxu1 %v2832_v51 }
 0x37a   : > { %2402 = vmatmul.mubr.f32.vlgmr.msra.gmra.mrb[2].mxu1 %v1016_v55 }
 0x37b   : > { %2835 = vmatpush3.bf16.msra.mxu1 %v2832_v51  ;;  %2436 = vmatprep.mubr.f32.mxu1 %v1203_v58  ;;  %v1858_v58 = vld [vmem:[%s3774_s3 + $0x4a8] sm:$0xff] }
 0x37c   : > { %2837 = vmatprep.subr.bf16.mxu1 %v2836_v54 }
 0x37f   : > { %2839 = vmatpush3.bf16.msra.mxu1 %v2836_v54 }
 0x380   : > { %2841 = vmatprep.subr.bf16.mxu1 %v2840_v59 }
 0x383   : > { %2843 = vmatpush3.bf16.msra.mxu1 %v2840_v59  ;;  %v2904_v59 = vpack.c.bf16 %v1858_v58, %v1857_v57 }
 0x384   : > { %2845 = vmatprep.subr.bf16.mxu1 %v2844_v62 }
 0x387   : > { %2847 = vmatpush3.bf16.msra.mxu1 %v2844_v62 }
 0x388   : > { %2849 = vmatprep.subr.bf16.mxu1 %v2848_v1 }
 0x38b   : > { %2851 = vmatpush3.bf16.msra.mxu1 %v2848_v1  ;;  %v1862_v1 = vld [vmem:[%s3774_s3 + $0x4c8] sm:$0xff] }
 0x38c   : > { %2853 = vmatprep.subr.bf16.mxu1 %v2852_v4  ;;  %v2912_v2 = vpack.c.bf16 %v1862_v1, %v1861_v0 }
 0x38f   : > { %2855 = vmatpush3.bf16.msra.mxu1 %v2852_v4  ;;  %v1864_v4 = vld [vmem:[%s3774_s3 + $0x4d8] sm:$0xff] }
 0x390   : > { %2857 = vmatprep.subr.bf16.mxu1 %v2856_v7  ;;  %v2916_v5 = vpack.c.bf16 %v1864_v4, %v1863_v3 }
 0x393   : > { %2859 = vmatpush3.bf16.msra.mxu1 %v2856_v7  ;;  %v1866_v7 = vld [vmem:[%s3774_s3 + $0x4e8] sm:$0xff] }
 0x394   : > { %2861 = vmatprep.subr.bf16.mxu1 %v2860_v10  ;;  %v2920_v8 = vpack.c.bf16 %v1866_v7, %v1865_v6 }
 0x397   : > { %2863 = vmatpush3.bf16.msra.mxu1 %v2860_v10  ;;  %v1868_v10 = vld [vmem:[%s3774_s3 + $0x4f8] sm:$0xff] }
 0x39a   : > { %2437 = vmatmul.mubr.f32.vlgmr.msra.gmra.mrb[2].mxu1 %v1204_v11  ;;  %v2924_v11 = vpack.c.bf16 %v1868_v10, %v1867_v9 }
 0x46d   : > { %v2438_v37 = vpop.f32.mrb[2].mxu1 }
 0x46e   : > { %v1308_v39 = vmul.f32 %v2438_v37, %v1850_v36  ;;  %v1288_v40 = vpop.f32.mrb[3].mxu1 }
 0x46f   : > { %v1307_v41 = vmul.f32 %v1850_v36, %v1288_v40  ;;  %v1900_v36 = vld [vmem:[%s3774_s3 + $0x5f8] sm:$0xff] }
 0x470   : > { %v1318_v42 = vadd.f32 %v1852_v38, %v1308_v39  ;;  %v1902_v39 = vld [vmem:[%s3775_s4 + $0x3] ss:$0 sm:$0xff] }
 0x471   : > { %v1317_v43 = vadd.f32 %v1852_v38, %v1307_v41  ;;  %v1904_v41 = vld [vmem:[%s3776_s5 + $0x3] ss:$0 sm:$0xff] }
 0x472   : > { %v1322_v44 = vmul.f32 0.70710677, %v1318_v42  ;;  %v1320_v48 = vmul.f32 0.5, %v1318_v42 }
 0x473   : > { %v1321_v45 = vmul.f32 0.70710677, %v1317_v43  ;;  %v1319_v50 = vmul.f32 0.5, %v1317_v43 }
 0x474   : > { %2994 = verf.f32 %v1322_v44 }
 0x475   : > { %2996 = verf.f32 %v1321_v45 }
 0x47e   : > { %v2995_v46 = vpop.eup %2994 }
 0x47f   : > { %v2997_v47 = vpop.eup %2996  ;;  %v1326_v49 = vadd.f32 1.0, %v2995_v46 }
 0x480   : > { %v1325_v51 = vadd.f32 1.0, %v2997_v47 }
 0x481   : > { %v1328_v54 = vmul.f32 %v1326_v49, %v1320_v48 }
 0x482   : > { %v1327_v55 = vmul.f32 %v1325_v51, %v1319_v50 }
 0x483   : > { %1330 = vst [vmem:[#allocation2 + $0x9] sm:$0xff] %v1328_v54 }
 0x484   : > { %1329 = vst [vmem:[#allocation2 + $0x1] sm:$0xff] %v1327_v55  ;;  %2471 = vmatprep.mubr.f32.mxu0 %v1327_v55 }
 0x485   : > { %2472 = vmatmul.mubr.f32.vlgmr.msra.gmra.mrb[4].mxu0 %v1328_v54 }
 0x486   : > { %2899 = vmatpush3.bf16.msra.mxu0 %v2896_v35  ;;  %v1899_v35 = vld [vmem:[%s3774_s3 + $0x5f0] sm:$0xff] }
 0x487   : > { %2901 = vmatprep.subr.bf16.mxu0 %v2900_v56  ;;  %v2956_v37 = vpack.c.bf16 %v1900_v36, %v1899_v35 }
 0x48a   : > { %2903 = vmatpush3.bf16.msra.mxu0 %v2900_v56  ;;  %v1520_v38 = vld [vmem:[#allocation2 + $0xa] sm:$0xff] }
 0x48b   : > { %v1331_v62 = vld [vmem:[#allocation2] sm:$0xff]  ;;  %2905 = vmatprep.subr.bf16.mxu0 %v2904_v59  ;;  %v1332_v18 = vld [vmem:[#allocation2 + $0x8] sm:$0xff] }
 0x48c   : > { %2506 = vmatprep.mubr.f32.mxu0 %v1331_v62  ;;  %v1519_v21 = vld [vmem:[#allocation2 + $0x2] sm:$0xff] }
 0x48e   : > { %2907 = vmatpush3.bf16.msra.mxu0 %v2904_v59 }
 0x48f   : > { %2909 = vmatprep.subr.bf16.mxu0 %v2908_v63 }
 0x492   : > { %2911 = vmatpush3.bf16.msra.mxu0 %v2908_v63 }
 0x493   : > { %2913 = vmatprep.subr.bf16.mxu0 %v2912_v2 }
 0x496   : > { %2915 = vmatpush3.bf16.msra.mxu0 %v2912_v2 }
 0x497   : > { %2917 = vmatprep.subr.bf16.mxu0 %v2916_v5 }
 0x49a   : > { %2919 = vmatpush3.bf16.msra.mxu0 %v2916_v5 }
 0x49b   : > { %2921 = vmatprep.subr.bf16.mxu0 %v2920_v8 }
 0x49e   : > { %2923 = vmatpush3.bf16.msra.mxu0 %v2920_v8 }
 0x49f   : > { %2925 = vmatprep.subr.bf16.mxu0 %v2924_v11 }
 0x4a2   : > { %2927 = vmatpush3.bf16.msra.mxu0 %v2924_v11 }
 0x4a3   : > { %2929 = vmatprep.subr.bf16.mxu0 %v2928_v14 }
 0x4a5   : > { %2507 = vmatmul.mubr.f32.vlgmr.msra.gmra.mrb[4].mxu0 %v1332_v18 }
 0x4a6   : > { %2931 = vmatpush3.bf16.msra.mxu0 %v2928_v14  ;;  %2541 = vmatprep.mubr.f32.mxu0 %v1519_v21 }
 0x4a7   : > { %2933 = vmatprep.subr.bf16.mxu0 %v2932_v17 }
 0x4aa   : > { %2935 = vmatpush3.bf16.msra.mxu0 %v2932_v17 }
 0x4ab   : > { %2937 = vmatprep.subr.bf16.mxu0 %v2936_v22 }
 0x4ae   : > { %2939 = vmatpush3.bf16.msra.mxu0 %v2936_v22 }
 0x4af   : > { %2941 = vmatprep.subr.bf16.mxu0 %v2940_v25 }
 0x4b2   : > { %2943 = vmatpush3.bf16.msra.mxu0 %v2940_v25 }
 0x4b3   : > { %2945 = vmatprep.subr.bf16.mxu0 %v2944_v28 }
 0x4b6   : > { %2947 = vmatpush3.bf16.msra.mxu0 %v2944_v28 }
 0x4b7   : > { %2949 = vmatprep.subr.bf16.mxu0 %v2948_v31 }
 0x4ba   : > { %2951 = vmatpush3.bf16.msra.mxu0 %v2948_v31 }
 0x4bb   : > { %2953 = vmatprep.subr.bf16.mxu0 %v2952_v34 }
 0x4be   : > { %2955 = vmatpush3.bf16.msra.mxu0 %v2952_v34 }
 0x4bf   : > { %2957 = vmatprep.subr.bf16.mxu0 %v2956_v37 }
 0x4c2   : > { %2959 = vmatpush3.bf16.msra.mxu0 %v2956_v37 }
 0x4c5   : > { %2542 = vmatmul.mubr.f32.vlgmr.msra.gmra.mrb[4].mxu0 %v1520_v38 }
 0x598   : > { %v2543_v40 = vpop.f32.mrb[4].mxu0 }
 0x599   : > { %v1624_v42 = vmul.f32 %v2543_v40, %v1902_v39  ;;  %v1604_v43 = vpop.f32.mrb[5].mxu0 }
 0x59a   : > { %v1623_v44 = vmul.f32 %v1902_v39, %v1604_v43 }
 0x59b   : > { %v1634_v45 = vadd.f32 %v1904_v41, %v1624_v42 }
 0x59c   : > { %v1633_v46 = vadd.f32 %v1904_v41, %v1623_v44 }
 0x59d   : > { %v1638_v47 = vmul.f32 0.70710677, %v1634_v45  ;;  %v1636_v51 = vmul.f32 0.5, %v1634_v45 }
 0x59e   : > { %v1637_v48 = vmul.f32 0.70710677, %v1633_v46  ;;  %v1635_v53 = vmul.f32 0.5, %v1633_v46 }
 0x59f   : > { %2998 = verf.f32 %v1638_v47 }
 0x5a0   : > { %3000 = verf.f32 %v1637_v48 }
 0x5a9   : > { %v2999_v49 = vpop.eup %2998 }
 0x5aa   : > { %v3001_v50 = vpop.eup %3000  ;;  %v1642_v52 = vadd.f32 1.0, %v2999_v49 }
 0x5ab   : > { %v1641_v54 = vadd.f32 1.0, %v3001_v50 }
 0x5ac   : > { %v1644_v55 = vmul.f32 %v1642_v52, %v1636_v51 }
 0x5ad   : > { %v1643_v56 = vmul.f32 %v1641_v54, %v1635_v53 }
 0x5ae   : > { %1646 = vst [vmem:[#allocation2 + $0x9] sm:$0xff] %v1644_v55  ;;  %1650 = vst [vmem:[%s248_s10 + $0x8] sm:$0xff] %v1644_v55 }
 0x5af   : > { %1645 = vst [vmem:[#allocation2 + $0x1] sm:$0xff] %v1643_v56  ;;  %1649 = vst [vmem:[%s248_s10] sm:$0xff] %v1643_v56 }
 0x5b0 PF: > { %s16_s21 = sadd.s32 1, %s3008_s21  }
 0x5b1   : > { %p13_p4 = scmp.ge.s32.totalorder %s16_s21, 6  }
 0x5b3   :  { %15 = sbr.rel (!%p13_p4) target bundleno = 1 (0x1), region = 91 }

</bundles_post_ra>
